<compile_context>
chip_gen: v5e
topology: v5e:2x2
jax: 0.10.0
libtpu: 0.0.40
codegen_flags: <defaults>
</compile_context>

<pallas_src>
import functools

import jax
import jax.numpy as jnp
from jax import lax
from jax.experimental import pallas as pl
from jax.experimental.pallas import tpu as pltpu


# ----------------------------------------------------------------------------
# Pallas kernel: selective scan for one (batch, d-tile) grid point.
# ----------------------------------------------------------------------------
def _make_scan_kernel(L, T, n, td):
    """Build the kernel for static sizes: L scan steps, chunk T, dstate n, d-tile td."""
    num_chunks = L // T

    def kernel(u_ref, dtraw_ref, z_ref, b_ref, c_ref, at_ref, dvec_ref, out_ref):
        # Blocks: u/dtraw/z/out: (1, L, td) -- L on sublanes, td on lanes.
        #         b/c:           (1, L, n)
        #         at:            (n, td)    == A^T tile
        #         dvec:          (1, td)
        a_t = at_ref[...]                    # (n, td)
        dvec = dvec_ref[...]                 # (1, td)

        def chunk_body(cidx, x):             # x: (n, td) running SSM state
            off = pl.multiple_of(cidx * T, T)

            dtraw = dtraw_ref[0, pl.ds(off, T), :]                   # (T, td)
            # numerically stable softplus (delta_softplus=True)
            dt = jnp.maximum(dtraw, 0.0) + jnp.log1p(jnp.exp(-jnp.abs(dtraw)))
            u_c = u_ref[0, pl.ds(off, T), :]                         # (T, td)
            du_c = dt * u_c                                          # (T, td)
            z_c = z_ref[0, pl.ds(off, T), :]                         # (T, td)

            # One small transpose per chunk so every per-step B_l / C_l column
            # is a *static* lane slice (no per-step relayout, no big scratch).
            bT = jnp.transpose(b_ref[0, pl.ds(off, T), :])           # (n, T)
            cT = jnp.transpose(c_ref[0, pl.ds(off, T), :])           # (n, T)

            y_rows = []
            for t in range(T):               # static unroll of the recurrence
                dA = jnp.exp(dt[t:t + 1, :] * a_t)                   # (n, td)
                x = dA * x + bT[:, t:t + 1] * du_c[t:t + 1, :]       # (n, td)
                # y_l[d] = sum_n x[n, d] * C_l[n]   (C-contraction folded in)
                y_rows.append(jnp.sum(x * cT[:, t:t + 1], axis=0, keepdims=True))
            y_c = jnp.concatenate(y_rows, axis=0)                    # (T, td)

            # silu(z) = z * sigmoid(z); reciprocal routed to the EUP.
            silu_z = z_c * pl.reciprocal(1.0 + jnp.exp(-z_c), approx=True)
            out_ref[0, pl.ds(off, T), :] = (
                (y_c + u_c * dvec) * silu_z).astype(out_ref.dtype)
            return x

        lax.fori_loop(0, num_chunks, chunk_body, jnp.zeros((n, td), jnp.float32))

    return kernel


# ----------------------------------------------------------------------------
# Wrapper: layout prep + pallas_call.
# ----------------------------------------------------------------------------
def selective_scan_pallas(u_t, delta, A, Bp, Cp, D, z, delta_bias):
    """u_t: (b, L, d) activations already in kernel layout.
       delta, delta_bias, z: (b, d, L); Bp, Cp: (b, n, L); A: (d, n); D: (d,).
       Returns out in (b, L, d) layout."""
    b, L, d = u_t.shape
    n = A.shape[1]
    f32 = jnp.float32

    # Parameter-side, one-time layout prep (in a real deployment these would be
    # stored pre-transposed).  delta + delta_bias fused -> one DMA stream fewer.
    dtraw_t = jnp.transpose(delta + delta_bias, (0, 2, 1)).astype(f32)   # (b, L, d)
    z_t = jnp.transpose(z, (0, 2, 1)).astype(f32)                        # (b, L, d)
    b_t = jnp.transpose(Bp, (0, 2, 1)).astype(f32)                       # (b, L, n)
    c_t = jnp.transpose(Cp, (0, 2, 1)).astype(f32)                       # (b, L, n)
    a_t = jnp.transpose(A, (1, 0)).astype(f32)                           # (n, d)
    d_vec = D.reshape(1, d).astype(f32)                                  # (1, d)
    u_t = u_t.astype(f32)

    # d-tile: lane-dense 128 when possible (demo d=64 -> full d, half lanes).
    td = 128 if d % 128 == 0 else d
    d_tiles = d // td
    # scan chunk (static unroll factor); sublane-aligned when L % 8 == 0.
    T = 8 if L % 8 == 0 else L

    per_bd = lambda i, j: (i, 0, j)   # batch- and d-tiled tensors
    per_b = lambda i, j: (i, 0, 0)    # B / C: shared across d tiles
    per_d = lambda i, j: (0, j)       # A^T / D: shared across batch

    # Rough double-buffered per-grid-step VMEM footprint (bytes); set the scoped
    # limit explicitly (v7x: 64 MiB physical, 32 MiB default scoped).
    est = 2 * 4 * (4 * L * td + 2 * L * n + n * td + td)
    vmem_limit = int(max(32 * 2**20, min(4 * est, 48 * 2**20)))

    out = pl.pallas_call(
        _make_scan_kernel(L, T, n, td),
        out_shape=jax.ShapeDtypeStruct((b, L, d), f32),
        grid_spec=pltpu.PrefetchScalarGridSpec(
            num_scalar_prefetch=0,
            grid=(b, d_tiles),
            in_specs=[
                pl.BlockSpec((1, L, td), per_bd),   # u
                pl.BlockSpec((1, L, td), per_bd),   # delta + delta_bias (fused)
                pl.BlockSpec((1, L, td), per_bd),   # z
                pl.BlockSpec((1, L, n), per_b),     # B
                pl.BlockSpec((1, L, n), per_b),     # C
                pl.BlockSpec((n, td), per_d),       # A^T
                pl.BlockSpec((1, td), per_d),       # D
            ],
            out_specs=pl.BlockSpec((1, L, td), per_bd),
        ),
        compiler_params=pltpu.CompilerParams(
            dimension_semantics=("parallel", "parallel"),
            vmem_limit_bytes=vmem_limit,
        ),
    )(u_t, dtraw_t, z_t, b_t, c_t, a_t, d_vec)
    return out                                                        # (b, L, d)


# ----------------------------------------------------------------------------
# Token un/folding glue -- produces/consumes the kernel's (B, L, d) layout
# directly (the transpose is folded into the unfold permute chain).
# ----------------------------------------------------------------------------
def _extract_tokens_Ld(x, ws):
    B, C, H, W = x.shape
    nH, nW = H // ws, W // ws
    t = x.reshape(B, C, nH, ws, nW, ws).transpose(0, 1, 3, 5, 2, 4)   # (B,C,ws,ws,nH,nW)
    return t.reshape(B, C * ws * ws, nH * nW)                          # (B, L, d)


def _tokens_Ld_to_image(out_t, B, C, nH, nW, ws):
    o = out_t.reshape(B, C, ws, ws, nH, nW).transpose(0, 1, 4, 2, 5, 3)  # (B,C,nH,ws,nW,ws)
    return o.reshape(B, C, nH * ws, nW * ws)


def selective_ssm_block_forward(x, params, window_size):
    B, C, H, W = x.shape
    ws = window_size
    nH, nW = H // ws, W // ws
    tokens_t = _extract_tokens_Ld(x, ws)                               # (B, L, d)
    out_t = selective_scan_pallas(tokens_t, params["delta"], params["A"],
                                  params["B"], params["C"], params["D"],
                                  params["z"], params["delta_bias"])
    return _tokens_Ld_to_image(out_t, B, C, nH, nW, ws)


# ----------------------------------------------------------------------------
# Pure-JAX reference (module / selective_scan_ref semantics) for validation.
# Uses the module's own (B, N, token_dim) layout end-to-end, independent of the
# kernel's layout choices.
# ----------------------------------------------------------------------------
def _extract_tokens_module(x, ws):
    B, C, H, W = x.shape
    nH, nW = H // ws, W // ws
    t = x.reshape(B, C, nH, ws, nW, ws).transpose(0, 1, 2, 4, 3, 5)
    t = t.reshape(B, C, nH * nW, ws * ws).transpose(0, 2, 1, 3)
    return t.reshape(B, nH * nW, C * ws * ws)


def _tokens_module_to_image(out, B, C, nH, nW, ws):
    o = out.reshape(B, nH, nW, C, ws, ws).transpose(0, 3, 1, 4, 2, 5)
    return o.reshape(B, C, nH * ws, nW * ws)


def _selective_scan_ref(u, delta, A, Bp, Cp, D, z, delta_bias):
    # NOTE: the module stores delta_bias with shape (b, d, l); it is applied as
    # an elementwise bias (it is zeros at init anyway).
    dt = jax.nn.softplus(delta + delta_bias)                 # (b, d, l)
    dA = jnp.exp(jnp.einsum("bdl,dn->bdln", dt, A))
    dBu = jnp.einsum("bdl,bnl,bdl->bdln", dt, Bp, u)
    b, d, L = u.shape
    n = A.shape[1]
    x = jnp.zeros((b, d, n), jnp.float32)
    ys = []
    for i in range(L):
        x = dA[:, :, i] * x + dBu[:, :, i]
        ys.append(jnp.einsum("bdn,bn->bd", x, Cp[:, :, i]))
    y = jnp.stack(ys, axis=2)
    out = y + u * D[None, :, None]
    return out * jax.nn.silu(z)


def _reference_forward(x, params, window_size):
    B, C, H, W = x.shape
    ws = window_size
    nH, nW = H // ws, W // ws
    tokens = _extract_tokens_module(x, ws)                   # (B, N, token_dim)
    out = _selective_scan_ref(jnp.transpose(tokens, (0, 2, 1)).transpose(0, 2, 1),
                              params["delta"], params["A"], params["B"],
                              params["C"], params["D"], params["z"],
                              params["delta_bias"])
    return _tokens_module_to_image(out, B, C, nH, nW, ws)


# ----------------------------------------------------------------------------
# Main: deterministic small-shape demo.
# ----------------------------------------------------------------------------
if __name__ == "__main__":
    batch = 2
    window_size = 2
    patch_channels = 4
    image_size = 16
    new_spatial = image_size // window_size             # 8
    num_features = new_spatial * new_spatial            # 64  (= d = dstate n)
    sequence_length = patch_channels * window_size**2   # 16  (= L, token dim)

    key = jax.random.PRNGKey(0)
    k0, k1, k2, k3, k4 = jax.random.split(key, 5)

    # NOTE: the torch default A_init_range=(1, 16) with A > 0 makes exp(dt*A)^L
    # overflow fp32 for a synthetic random demo (real Mamba uses A < 0); keep a
    # smaller positive range so the demo stays finite while preserving the math.
    A = jax.random.uniform(k0, (num_features, num_features),
                           minval=0.05, maxval=0.5, dtype=jnp.float32)
    params = {
        "A": A,
        "B": jax.random.normal(k1, (batch, num_features, sequence_length), jnp.float32),
        "C": jax.random.normal(k2, (batch, num_features, sequence_length), jnp.float32),
        "D": jnp.ones((num_features,), jnp.float32),
        "delta": jax.random.normal(k3, (batch, num_features, sequence_length), jnp.float32),
        "delta_bias": jnp.zeros((batch, num_features, sequence_length), jnp.float32),
        "z": jnp.ones((batch, num_features, sequence_length), jnp.float32),
    }

    x = jax.random.normal(k4, (batch, patch_channels, image_size, image_size), jnp.float32)

    fwd = jax.jit(functools.partial(selective_ssm_block_forward, window_size=window_size))
    out = fwd(x, params)
    out = jax.block_until_ready(out)

    assert out.shape == (batch, patch_channels, image_size, image_size), out.shape

    ref = _reference_forward(x, params, window_size)
    assert jnp.all(jnp.isfinite(out)), "non-finite output"
    assert jnp.allclose(out, ref, rtol=1e-3, atol=1e-3), "mismatch vs JAX reference"

    print("KERNEL_OK")
</pallas_src>

<mosaic_0001>
module attributes {stable_mosaic.version = 11 : i64} {
  func.func @kernel(%arg0: i32, %arg1: i32, %arg2: memref<1x16x64xf32, #tpu.memory_space<vmem>>, %arg3: memref<1x16x64xf32, #tpu.memory_space<vmem>>, %arg4: memref<1x16x64xf32, #tpu.memory_space<vmem>>, %arg5: memref<1x16x64xf32, #tpu.memory_space<vmem>>, %arg6: memref<1x16x64xf32, #tpu.memory_space<vmem>>, %arg7: memref<64x64xf32, #tpu.memory_space<vmem>>, %arg8: memref<1x64xf32, #tpu.memory_space<vmem>>, %arg9: memref<1x16x64xf32, #tpu.memory_space<vmem>>) attributes {dimension_semantics = [#tpu.dimension_semantics<parallel>, #tpu.dimension_semantics<parallel>], iteration_bounds = array<i64: 2, 1>, scalar_prefetch = 0 : i64, scratch_operands = 0 : i64, tpu.core_type = #tpu.core_type<tc>, window_params = [{transform_indices = @transform_0, window_bounds = array<i64: 1, 16, 64>}, {transform_indices = @transform_1, window_bounds = array<i64: 1, 16, 64>}, {transform_indices = @transform_2, window_bounds = array<i64: 1, 16, 64>}, {transform_indices = @transform_3, window_bounds = array<i64: 1, 16, 64>}, {transform_indices = @transform_4, window_bounds = array<i64: 1, 16, 64>}, {transform_indices = @transform_5, window_bounds = array<i64: 64, 64>}, {transform_indices = @transform_6, window_bounds = array<i64: 1, 64>}, {transform_indices = @transform_7, window_bounds = array<i64: 1, 16, 64>}]} {
    %c0 = arith.constant 0 : index
    %c0_0 = arith.constant 0 : index
    %0 = vector.load %arg7[%c0, %c0_0] : memref<64x64xf32, #tpu.memory_space<vmem>>, vector<64x64xf32>
    %c0_1 = arith.constant 0 : index
    %c0_2 = arith.constant 0 : index
    %1 = vector.load %arg8[%c0_1, %c0_2] : memref<1x64xf32, #tpu.memory_space<vmem>>, vector<1x64xf32>
    %cst = arith.constant 0.000000e+00 : f32
    %2 = vector.broadcast %cst : f32 to vector<64x64xf32>
    %c0_i32 = arith.constant 0 : i32
    %c2_i32 = arith.constant 2 : i32
    %3 = arith.addi %c0_i32, %c2_i32 : i32
    %c1_i32 = arith.constant 1 : i32
    %4 = scf.for %arg10 = %c0_i32 to %3 step %c1_i32 iter_args(%arg11 = %2) -> (vector<64x64xf32>)  : i32 {
      %c8_i32 = arith.constant 8 : i32
      %5 = arith.muli %arg10, %c8_i32 : i32
      %6 = tpu.assume_multiple %5, 8 : i32
      %c0_4 = arith.constant 0 : index
      %7 = arith.index_cast %6 : i32 to index
      %c0_5 = arith.constant 0 : index
      %8 = vector.load %arg3[%c0_4, %7, %c0_5] : memref<1x16x64xf32, #tpu.memory_space<vmem>>, vector<1x8x64xf32>
      %9 = vector.shape_cast %8 : vector<1x8x64xf32> to vector<8x64xf32>
      %cst_6 = arith.constant 0.000000e+00 : f32
      %10 = vector.broadcast %cst_6 : f32 to vector<8x64xf32>
      %11 = arith.maximumf %9, %10 : vector<8x64xf32>
      %12 = math.absf %9 : vector<8x64xf32>
      %cst_7 = arith.constant 0.000000e+00 : f32
      %13 = vector.broadcast %cst_7 : f32 to vector<8x64xf32>
      %14 = arith.subf %13, %12 : vector<8x64xf32>
      %15 = math.exp %14 : vector<8x64xf32>
      %16 = math.log1p %15 : vector<8x64xf32>
      %17 = arith.addf %11, %16 : vector<8x64xf32>
      %c0_8 = arith.constant 0 : index
      %18 = arith.index_cast %6 : i32 to index
      %c0_9 = arith.constant 0 : index
      %19 = vector.load %arg2[%c0_8, %18, %c0_9] : memref<1x16x64xf32, #tpu.memory_space<vmem>>, vector<1x8x64xf32>
      %20 = vector.shape_cast %19 : vector<1x8x64xf32> to vector<8x64xf32>
      %21 = arith.mulf %17, %20 : vector<8x64xf32>
      %c0_10 = arith.constant 0 : index
      %22 = arith.index_cast %6 : i32 to index
      %c0_11 = arith.constant 0 : index
      %23 = vector.load %arg4[%c0_10, %22, %c0_11] : memref<1x16x64xf32, #tpu.memory_space<vmem>>, vector<1x8x64xf32>
      %24 = vector.shape_cast %23 : vector<1x8x64xf32> to vector<8x64xf32>
      %c0_12 = arith.constant 0 : index
      %25 = arith.index_cast %6 : i32 to index
      %c0_13 = arith.constant 0 : index
      %26 = vector.load %arg5[%c0_12, %25, %c0_13] : memref<1x16x64xf32, #tpu.memory_space<vmem>>, vector<1x8x64xf32>
      %27 = vector.shape_cast %26 : vector<1x8x64xf32> to vector<8x64xf32>
      %28 = tpu.transpose %27, [1, 0] : vector<8x64xf32> -> vector<64x8xf32>
      %c0_14 = arith.constant 0 : index
      %29 = arith.index_cast %6 : i32 to index
      %c0_15 = arith.constant 0 : index
      %30 = vector.load %arg6[%c0_14, %29, %c0_15] : memref<1x16x64xf32, #tpu.memory_space<vmem>>, vector<1x8x64xf32>
      %31 = vector.shape_cast %30 : vector<1x8x64xf32> to vector<8x64xf32>
      %32 = tpu.transpose %31, [1, 0] : vector<8x64xf32> -> vector<64x8xf32>
      %33 = vector.extract_strided_slice %17 {offsets = [0, 0], sizes = [1, 64], strides = [1, 1]} : vector<8x64xf32> to vector<1x64xf32>
      %34 = vector.broadcast %33 : vector<1x64xf32> to vector<64x64xf32>
      %35 = arith.mulf %34, %0 : vector<64x64xf32>
      %36 = math.exp %35 : vector<64x64xf32>
      %37 = arith.mulf %36, %arg11 : vector<64x64xf32>
      %38 = vector.extract_strided_slice %28 {offsets = [0, 0], sizes = [64, 1], strides = [1, 1]} : vector<64x8xf32> to vector<64x1xf32>
      %39 = vector.extract_strided_slice %21 {offsets = [0, 0], sizes = [1, 64], strides = [1, 1]} : vector<8x64xf32> to vector<1x64xf32>
      %40 = vector.broadcast %38 : vector<64x1xf32> to vector<64x64xf32>
      %41 = vector.broadcast %39 : vector<1x64xf32> to vector<64x64xf32>
      %42 = arith.mulf %40, %41 : vector<64x64xf32>
      %43 = arith.addf %37, %42 : vector<64x64xf32>
      %44 = vector.extract_strided_slice %32 {offsets = [0, 0], sizes = [64, 1], strides = [1, 1]} : vector<64x8xf32> to vector<64x1xf32>
      %45 = vector.broadcast %44 : vector<64x1xf32> to vector<64x64xf32>
      %46 = arith.mulf %43, %45 : vector<64x64xf32>
      %cst_16 = arith.constant dense<0.000000e+00> : vector<64xf32>
      %47 = vector.multi_reduction <add>, %46, %cst_16 [0] : vector<64x64xf32> to vector<64xf32>
      %48 = vector.shape_cast %47 : vector<64xf32> to vector<1x64xf32>
      %49 = vector.extract_strided_slice %17 {offsets = [1, 0], sizes = [1, 64], strides = [1, 1]} : vector<8x64xf32> to vector<1x64xf32>
      %50 = vector.broadcast %49 : vector<1x64xf32> to vector<64x64xf32>
      %51 = arith.mulf %50, %0 : vector<64x64xf32>
      %52 = math.exp %51 : vector<64x64xf32>
      %53 = arith.mulf %52, %43 : vector<64x64xf32>
      %54 = vector.extract_strided_slice %28 {offsets = [0, 1], sizes = [64, 1], strides = [1, 1]} : vector<64x8xf32> to vector<64x1xf32>
      %55 = vector.extract_strided_slice %21 {offsets = [1, 0], sizes = [1, 64], strides = [1, 1]} : vector<8x64xf32> to vector<1x64xf32>
      %56 = vector.broadcast %54 : vector<64x1xf32> to vector<64x64xf32>
      %57 = vector.broadcast %55 : vector<1x64xf32> to vector<64x64xf32>
      %58 = arith.mulf %56, %57 : vector<64x64xf32>
      %59 = arith.addf %53, %58 : vector<64x64xf32>
      %60 = vector.extract_strided_slice %32 {offsets = [0, 1], sizes = [64, 1], strides = [1, 1]} : vector<64x8xf32> to vector<64x1xf32>
      %61 = vector.broadcast %60 : vector<64x1xf32> to vector<64x64xf32>
      %62 = arith.mulf %59, %61 : vector<64x64xf32>
      %cst_17 = arith.constant dense<0.000000e+00> : vector<64xf32>
      %63 = vector.multi_reduction <add>, %62, %cst_17 [0] : vector<64x64xf32> to vector<64xf32>
      %64 = vector.shape_cast %63 : vector<64xf32> to vector<1x64xf32>
      %65 = vector.extract_strided_slice %17 {offsets = [2, 0], sizes = [1, 64], strides = [1, 1]} : vector<8x64xf32> to vector<1x64xf32>
      %66 = vector.broadcast %65 : vector<1x64xf32> to vector<64x64xf32>
      %67 = arith.mulf %66, %0 : vector<64x64xf32>
      %68 = math.exp %67 : vector<64x64xf32>
      %69 = arith.mulf %68, %59 : vector<64x64xf32>
      %70 = vector.extract_strided_slice %28 {offsets = [0, 2], sizes = [64, 1], strides = [1, 1]} : vector<64x8xf32> to vector<64x1xf32>
      %71 = vector.extract_strided_slice %21 {offsets = [2, 0], sizes = [1, 64], strides = [1, 1]} : vector<8x64xf32> to vector<1x64xf32>
      %72 = vector.broadcast %70 : vector<64x1xf32> to vector<64x64xf32>
      %73 = vector.broadcast %71 : vector<1x64xf32> to vector<64x64xf32>
      %74 = arith.mulf %72, %73 : vector<64x64xf32>
      %75 = arith.addf %69, %74 : vector<64x64xf32>
      %76 = vector.extract_strided_slice %32 {offsets = [0, 2], sizes = [64, 1], strides = [1, 1]} : vector<64x8xf32> to vector<64x1xf32>
      %77 = vector.broadcast %76 : vector<64x1xf32> to vector<64x64xf32>
      %78 = arith.mulf %75, %77 : vector<64x64xf32>
      %cst_18 = arith.constant dense<0.000000e+00> : vector<64xf32>
      %79 = vector.multi_reduction <add>, %78, %cst_18 [0] : vector<64x64xf32> to vector<64xf32>
      %80 = vector.shape_cast %79 : vector<64xf32> to vector<1x64xf32>
      %81 = vector.extract_strided_slice %17 {offsets = [3, 0], sizes = [1, 64], strides = [1, 1]} : vector<8x64xf32> to vector<1x64xf32>
      %82 = vector.broadcast %81 : vector<1x64xf32> to vector<64x64xf32>
      %83 = arith.mulf %82, %0 : vector<64x64xf32>
      %84 = math.exp %83 : vector<64x64xf32>
      %85 = arith.mulf %84, %75 : vector<64x64xf32>
      %86 = vector.extract_strided_slice %28 {offsets = [0, 3], sizes = [64, 1], strides = [1, 1]} : vector<64x8xf32> to vector<64x1xf32>
      %87 = vector.extract_strided_slice %21 {offsets = [3, 0], sizes = [1, 64], strides = [1, 1]} : vector<8x64xf32> to vector<1x64xf32>
      %88 = vector.broadcast %86 : vector<64x1xf32> to vector<64x64xf32>
      %89 = vector.broadcast %87 : vector<1x64xf32> to vector<64x64xf32>
      %90 = arith.mulf %88, %89 : vector<64x64xf32>
      %91 = arith.addf %85, %90 : vector<64x64xf32>
      %92 = vector.extract_strided_slice %32 {offsets = [0, 3], sizes = [64, 1], strides = [1, 1]} : vector<64x8xf32> to vector<64x1xf32>
      %93 = vector.broadcast %92 : vector<64x1xf32> to vector<64x64xf32>
      %94 = arith.mulf %91, %93 : vector<64x64xf32>
      %cst_19 = arith.constant dense<0.000000e+00> : vector<64xf32>
      %95 = vector.multi_reduction <add>, %94, %cst_19 [0] : vector<64x64xf32> to vector<64xf32>
      %96 = vector.shape_cast %95 : vector<64xf32> to vector<1x64xf32>
      %97 = vector.extract_strided_slice %17 {offsets = [4, 0], sizes = [1, 64], strides = [1, 1]} : vector<8x64xf32> to vector<1x64xf32>
      %98 = vector.broadcast %97 : vector<1x64xf32> to vector<64x64xf32>
      %99 = arith.mulf %98, %0 : vector<64x64xf32>
      %100 = math.exp %99 : vector<64x64xf32>
      %101 = arith.mulf %100, %91 : vector<64x64xf32>
      %102 = vector.extract_strided_slice %28 {offsets = [0, 4], sizes = [64, 1], strides = [1, 1]} : vector<64x8xf32> to vector<64x1xf32>
      %103 = vector.extract_strided_slice %21 {offsets = [4, 0], sizes = [1, 64], strides = [1, 1]} : vector<8x64xf32> to vector<1x64xf32>
      %104 = vector.broadcast %102 : vector<64x1xf32> to vector<64x64xf32>
      %105 = vector.broadcast %103 : vector<1x64xf32> to vector<64x64xf32>
      %106 = arith.mulf %104, %105 : vector<64x64xf32>
      %107 = arith.addf %101, %106 : vector<64x64xf32>
      %108 = vector.extract_strided_slice %32 {offsets = [0, 4], sizes = [64, 1], strides = [1, 1]} : vector<64x8xf32> to vector<64x1xf32>
      %109 = vector.broadcast %108 : vector<64x1xf32> to vector<64x64xf32>
      %110 = arith.mulf %107, %109 : vector<64x64xf32>
      %cst_20 = arith.constant dense<0.000000e+00> : vector<64xf32>
      %111 = vector.multi_reduction <add>, %110, %cst_20 [0] : vector<64x64xf32> to vector<64xf32>
      %112 = vector.shape_cast %111 : vector<64xf32> to vector<1x64xf32>
      %113 = vector.extract_strided_slice %17 {offsets = [5, 0], sizes = [1, 64], strides = [1, 1]} : vector<8x64xf32> to vector<1x64xf32>
      %114 = vector.broadcast %113 : vector<1x64xf32> to vector<64x64xf32>
      %115 = arith.mulf %114, %0 : vector<64x64xf32>
      %116 = math.exp %115 : vector<64x64xf32>
      %117 = arith.mulf %116, %107 : vector<64x64xf32>
      %118 = vector.extract_strided_slice %28 {offsets = [0, 5], sizes = [64, 1], strides = [1, 1]} : vector<64x8xf32> to vector<64x1xf32>
      %119 = vector.extract_strided_slice %21 {offsets = [5, 0], sizes = [1, 64], strides = [1, 1]} : vector<8x64xf32> to vector<1x64xf32>
      %120 = vector.broadcast %118 : vector<64x1xf32> to vector<64x64xf32>
      %121 = vector.broadcast %119 : vector<1x64xf32> to vector<64x64xf32>
      %122 = arith.mulf %120, %121 : vector<64x64xf32>
      %123 = arith.addf %117, %122 : vector<64x64xf32>
      %124 = vector.extract_strided_slice %32 {offsets = [0, 5], sizes = [64, 1], strides = [1, 1]} : vector<64x8xf32> to vector<64x1xf32>
      %125 = vector.broadcast %124 : vector<64x1xf32> to vector<64x64xf32>
      %126 = arith.mulf %123, %125 : vector<64x64xf32>
      %cst_21 = arith.constant dense<0.000000e+00> : vector<64xf32>
      %127 = vector.multi_reduction <add>, %126, %cst_21 [0] : vector<64x64xf32> to vector<64xf32>
      %128 = vector.shape_cast %127 : vector<64xf32> to vector<1x64xf32>
      %129 = vector.extract_strided_slice %17 {offsets = [6, 0], sizes = [1, 64], strides = [1, 1]} : vector<8x64xf32> to vector<1x64xf32>
      %130 = vector.broadcast %129 : vector<1x64xf32> to vector<64x64xf32>
      %131 = arith.mulf %130, %0 : vector<64x64xf32>
      %132 = math.exp %131 : vector<64x64xf32>
      %133 = arith.mulf %132, %123 : vector<64x64xf32>
      %134 = vector.extract_strided_slice %28 {offsets = [0, 6], sizes = [64, 1], strides = [1, 1]} : vector<64x8xf32> to vector<64x1xf32>
      %135 = vector.extract_strided_slice %21 {offsets = [6, 0], sizes = [1, 64], strides = [1, 1]} : vector<8x64xf32> to vector<1x64xf32>
      %136 = vector.broadcast %134 : vector<64x1xf32> to vector<64x64xf32>
      %137 = vector.broadcast %135 : vector<1x64xf32> to vector<64x64xf32>
      %138 = arith.mulf %136, %137 : vector<64x64xf32>
      %139 = arith.addf %133, %138 : vector<64x64xf32>
      %140 = vector.extract_strided_slice %32 {offsets = [0, 6], sizes = [64, 1], strides = [1, 1]} : vector<64x8xf32> to vector<64x1xf32>
      %141 = vector.broadcast %140 : vector<64x1xf32> to vector<64x64xf32>
      %142 = arith.mulf %139, %141 : vector<64x64xf32>
      %cst_22 = arith.constant dense<0.000000e+00> : vector<64xf32>
      %143 = vector.multi_reduction <add>, %142, %cst_22 [0] : vector<64x64xf32> to vector<64xf32>
      %144 = vector.shape_cast %143 : vector<64xf32> to vector<1x64xf32>
      %145 = vector.extract_strided_slice %17 {offsets = [7, 0], sizes = [1, 64], strides = [1, 1]} : vector<8x64xf32> to vector<1x64xf32>
      %146 = vector.broadcast %145 : vector<1x64xf32> to vector<64x64xf32>
      %147 = arith.mulf %146, %0 : vector<64x64xf32>
      %148 = math.exp %147 : vector<64x64xf32>
      %149 = arith.mulf %148, %139 : vector<64x64xf32>
      %150 = vector.extract_strided_slice %28 {offsets = [0, 7], sizes = [64, 1], strides = [1, 1]} : vector<64x8xf32> to vector<64x1xf32>
      %151 = vector.extract_strided_slice %21 {offsets = [7, 0], sizes = [1, 64], strides = [1, 1]} : vector<8x64xf32> to vector<1x64xf32>
      %152 = vector.broadcast %150 : vector<64x1xf32> to vector<64x64xf32>
      %153 = vector.broadcast %151 : vector<1x64xf32> to vector<64x64xf32>
      %154 = arith.mulf %152, %153 : vector<64x64xf32>
      %155 = arith.addf %149, %154 : vector<64x64xf32>
      %156 = vector.extract_strided_slice %32 {offsets = [0, 7], sizes = [64, 1], strides = [1, 1]} : vector<64x8xf32> to vector<64x1xf32>
      %157 = vector.broadcast %156 : vector<64x1xf32> to vector<64x64xf32>
      %158 = arith.mulf %155, %157 : vector<64x64xf32>
      %cst_23 = arith.constant dense<0.000000e+00> : vector<64xf32>
      %159 = vector.multi_reduction <add>, %158, %cst_23 [0] : vector<64x64xf32> to vector<64xf32>
      %160 = vector.shape_cast %159 : vector<64xf32> to vector<1x64xf32>
      %161 = tpu.concatenate %48, %64, %80, %96, %112, %128, %144, %160 in 0 : vector<1x64xf32>, vector<1x64xf32>, vector<1x64xf32>, vector<1x64xf32>, vector<1x64xf32>, vector<1x64xf32>, vector<1x64xf32>, vector<1x64xf32> -> vector<8x64xf32>
      %cst_24 = arith.constant 0.000000e+00 : f32
      %162 = vector.broadcast %cst_24 : f32 to vector<8x64xf32>
      %163 = arith.subf %162, %24 : vector<8x64xf32>
      %164 = math.exp %163 : vector<8x64xf32>
      %cst_25 = arith.constant 1.000000e+00 : f32
      %165 = vector.broadcast %cst_25 : f32 to vector<8x64xf32>
      %166 = arith.addf %165, %164 : vector<8x64xf32>
      %167 = tpu.reciprocal %166 {approx = true} : vector<8x64xf32> -> vector<8x64xf32>
      %168 = arith.mulf %24, %167 : vector<8x64xf32>
      %169 = vector.broadcast %1 : vector<1x64xf32> to vector<8x64xf32>
      %170 = arith.mulf %20, %169 : vector<8x64xf32>
      %171 = arith.addf %161, %170 : vector<8x64xf32>
      %172 = arith.mulf %171, %168 : vector<8x64xf32>
      %c0_26 = arith.constant 0 : index
      %173 = arith.index_cast %6 : i32 to index
      %c0_27 = arith.constant 0 : index
      %174 = vector.load %arg9[%c0_26, %173, %c0_27] : memref<1x16x64xf32, #tpu.memory_space<vmem>>, vector<1x8x64xf32>
      %175 = vector.shape_cast %174 : vector<1x8x64xf32> to vector<8x64xf32>
      %176 = vector.shape_cast %172 : vector<8x64xf32> to vector<1x8x64xf32>
      tpu.vector_store %arg9[%c0_26, %173, %c0_27], %176 {strides = array<i32>} : memref<1x16x64xf32, #tpu.memory_space<vmem>>, vector<1x8x64xf32>,
      scf.yield %155 : vector<64x64xf32>
    }
    %c2_i32_3 = arith.constant 2 : i32
    return
  }
  func.func @transform_0(%arg0: i32, %arg1: i32) -> (i32, i32, i32) {
    %c0_i32 = arith.constant 0 : i32
    %c0_i32_0 = arith.constant 0 : i32
    return %arg0, %c0_i32, %arg1 : i32, i32, i32
  }
  func.func @transform_1(%arg0: i32, %arg1: i32) -> (i32, i32, i32) {
    %c0_i32 = arith.constant 0 : i32
    %c0_i32_0 = arith.constant 0 : i32
    return %arg0, %c0_i32, %arg1 : i32, i32, i32
  }
  func.func @transform_2(%arg0: i32, %arg1: i32) -> (i32, i32, i32) {
    %c0_i32 = arith.constant 0 : i32
    %c0_i32_0 = arith.constant 0 : i32
    return %arg0, %c0_i32, %arg1 : i32, i32, i32
  }
  func.func @transform_3(%arg0: i32, %arg1: i32) -> (i32, i32, i32) {
    %c0_i32 = arith.constant 0 : i32
    %c0_i32_0 = arith.constant 0 : i32
    %c0_i32_1 = arith.constant 0 : i32
    return %arg0, %c0_i32, %c0_i32_0 : i32, i32, i32
  }
  func.func @transform_4(%arg0: i32, %arg1: i32) -> (i32, i32, i32) {
    %c0_i32 = arith.constant 0 : i32
    %c0_i32_0 = arith.constant 0 : i32
    %c0_i32_1 = arith.constant 0 : i32
    return %arg0, %c0_i32, %c0_i32_0 : i32, i32, i32
  }
  func.func @transform_5(%arg0: i32, %arg1: i32) -> (i32, i32) {
    %c0_i32 = arith.constant 0 : i32
    %c0_i32_0 = arith.constant 0 : i32
    return %c0_i32, %arg1 : i32, i32
  }
  func.func @transform_6(%arg0: i32, %arg1: i32) -> (i32, i32) {
    %c0_i32 = arith.constant 0 : i32
    %c0_i32_0 = arith.constant 0 : i32
    return %c0_i32, %arg1 : i32, i32
  }
  func.func @transform_7(%arg0: i32, %arg1: i32) -> (i32, i32, i32) {
    %c0_i32 = arith.constant 0 : i32
    %c0_i32_0 = arith.constant 0 : i32
    return %arg0, %c0_i32, %arg1 : i32, i32, i32
  }
}

</mosaic_0001>

<bundles_post_ra>
// kernel: selective_ssm_block_forward.1
= control target key start
LH: loop header
LB: loop body
LE: loop exit
PB: predicated region body
PF: predicated region fallthrough
CT: control target
= control target key end

     0   :  { %s2408_s24 = smov 0   ;;  %s2410_s25 = smov 0   ;;  %s3407_s0 = inlined_call_operand.vmem [shape: f32[2,16,64], index: 0, kind: input, shape index: {}]   ;;  %s3408_s1 = inlined_call_operand.vmem [shape: f32[2,16,64], index: 1, kind: input, shape index: {}]   ;;  %s3409_s2 = inlined_call_operand.vmem [shape: f32[2,16,64], index: 2, kind: input, shape index: {}]   ;;  %s3410_s3 = inlined_call_operand.vmem [shape: f32[2,16,64], index: 3, kind: input, shape index: {}]   ;;  %s3411_s4 = inlined_call_operand.vmem [shape: f32[2,16,64], index: 4, kind: input, shape index: {}]   ;;  %s3412_s5 = inlined_call_operand.vmem [shape: f32[64,64], index: 5, kind: input, shape index: {}]   ;;  %s3413_s6 = inlined_call_operand.vmem [shape: f32[1,64], index: 6, kind: input, shape index: {}]   ;;  %s3414_s7 = inlined_call_operand.vmem [shape: f32[2,16,64], index: 7, kind: output, shape index: {}]  }
   0x1   :  { %s2412_s26 = smov 0  }
   0x2 LB: > { %s29_s27 = sadd.s32 1, %s2318_s25  ;;  %p1964_p0 = scmp.ge.s32.totalorder %s2322_s26, 1  ;;  %s2322_s26 = sphi %s2412_s26, %s17_s26   ;;  %s2318_s25 = sphi %s2410_s25, %s3444_s25   ;;  %s2314_s24 = sphi %s2408_s24, %s3443_s24  }
   0x3   : > { %p31_p1 = scmp.ge.s32.totalorder %s29_s27, 2  ;;  %p323_p2 = scmp.lt.s32.totalorder %s2322_s26, 3 }
   0x5   : > { %s3446_s27 = smov (%p31_p1, %s29_s27), 0  ;;  %p324_p3 = pnand %p1964_p0, %p323_p2 }
   0x6   : > { %p394_p4 = scmp.lt.s32.totalorder (!%p324_p3), %s2314_s24, 1  ;;  %s2513_s22 = smov (!%p324_p3), 0  }
   0x7   : > { %327 = sbr.rel (%p324_p3) target bundleno = 818 (0x332), region = 48 }
   0xc   : > { %v2429_v0 = vld [vmem:[%s3412_s5] sm:$0xff]  ;;  %v2434_v1 = vld [vmem:[%s3412_s5 + $0x8] sm:$0xff]  ;;  %v2439_v2 = vld [vmem:[%s3412_s5 + $0x10] sm:$0xff]  ;;  %s3448_s24 = smov (!%p394_p4, %s2314_s24), 1  ;;  %v2497_v9 = vmov 0.0   ;;  %v2499_v10 = vmov 0.0  }
   0xd   : > { %v2444_v3 = vld [vmem:[%s3412_s5 + $0x18] sm:$0xff]  ;;  %v2449_v4 = vld [vmem:[%s3412_s5 + $0x20] sm:$0xff]  ;;  %v2454_v5 = vld [vmem:[%s3412_s5 + $0x28] sm:$0xff]  ;;  %s2471_s23 = sshll.u32 %s3448_s24, 4  ;;  %v2501_v11 = vmov 0.0   ;;  %v2503_v12 = vmov 0.0  }
   0xe   : > { %v2459_v6 = vld [vmem:[%s3412_s5 + $0x30] sm:$0xff]  ;;  %v2464_v7 = vld [vmem:[%s3412_s5 + $0x38] sm:$0xff]  ;;  %v2469_v8 = vld [vmem:[%s3413_s6] sm:$0x1]  ;;  %s401_s30 = scalar_lea.vmem %s3407_s0, %s2471_s23  ;;  %s409_s10 = scalar_lea.vmem %s3408_s1, %s2471_s23  ;;  %v2505_v13 = vmov 0.0   ;;  %v2507_v14 = vmov 0.0  }
   0xf   : > { %3427 = vst [vmem:[#allocation2_spill] sm:$0xff] %v2469_v8  ;;  %s417_s13 = scalar_lea.vmem %s3409_s2, %s2471_s23  ;;  %s422_s15 = scalar_lea.vmem %s3410_s3, %s2471_s23  ;;  %v2509_v15 = vmov 0.0   ;;  %v2511_v16 = vmov 0.0  }
  0x10   : > { %s427_s18 = scalar_lea.vmem %s3411_s4, %s2471_s23  ;;  %s442_s21 = scalar_lea.vmem %s3414_s7, %s2471_s23 }
  0x11 LB: >> { %s2543_s28 = sshll.u32 %s2358_s22, 3  ;;  %v2360_v18 = vmov 0   ;;  %v2361_v25 = vmov 1   ;;  %v3421_v31 = vmov 3   ;;  %v3419_v37 = vmov 4   ;;  %s457_s22 = sadd.s32 1, %s2358_s22   ;;  %s2358_s22 = sphi %s2513_s22, %s457_s22   ;;  %v2354_v16 = vphi %v2511_v16, %v3442_v16   ;;  %v2350_v15 = vphi %v2509_v15, %v3325_v15   ;;  %v2346_v14 = vphi %v2507_v14, %v3300_v14   ;;  %v2342_v13 = vphi %v2505_v13, %v3335_v13   ;;  %v2338_v12 = vphi %v2503_v12, %v3441_v12   ;;  %v2334_v11 = vphi %v2501_v11, %v1654_v11   ;;  %v2330_v10 = vphi %v2499_v10, %v3440_v10   ;;  %v2326_v9 = vphi %v2497_v9, %v1656_v9  }
  0x12   : >> { %s489_s9 = scalar_lea.vmem %s422_s15, %s2543_s28  ;;  %2091 = vset.pattern.permute.xlu1 %v2360_v18  ;;  %2094 = vset.pattern.permute.xlu2 %v2360_v18  ;;  %s523_s24 = scalar_lea.vmem %s427_s18, %s2543_s28  ;;  %v3417_v45 = vmov 5   ;;  %vm695_vm1 = vcmask 523264   ;;  %vm1718_vm2 = vcmask 1040384   ;;  %vm1720_vm3 = vcmask 1041408  }
  0x13   : >> { %v490_v17 = vld [vmem:[%s489_s9] sm:$0xff]  ;;  %s467_s17 = scalar_lea.vmem %s409_s10, %s2543_s28  ;;  %s2671_s29 = scalar_lea.vmem %s401_s30, %s2543_s28  ;;  %vm1722_vm4 = vcmask 1042432   ;;  %vm1724_vm5 = vcmask 1043456   ;;  %vm1726_vm6 = vcmask 1044480   ;;  %vm1728_vm7 = vcmask 1045504  }
  0x14   : >> { %491 = vxpose.xlu0.b32.start.end [1/1] (short) (narrow) %v490_v17, 64  ;;  %v524_v19 = vld [vmem:[%s523_s24] sm:$0xff]  ;;  %s487_s11 = scalar_lea.vmem %s417_s13, %s2543_s28  ;;  %vm1730_vm8 = vcmask 1046528   ;;  %s1744_s14 = scalar_lea.vmem %s442_s21, %s2543_s28 }
  0x15   : >> { %v468_v36 = vld [vmem:[%s467_s17] sm:$0xff]  ;;  %p454_p5 = scmp.ge.s32.totalorder %s457_s22, 2  }
  0x16   : >> { %v470_v38 = vand.u32 2147483647, %v468_v36  ;;  %v469_v50 = vmax.f32 %v468_v36, 0.0  ;;  %v485_v17 = vld [vmem:[%s2671_s29] sm:$0xff] }
  0x18   : >> { %v471_v39 = vsub.f32 0.0, %v470_v38 }
  0x1a   : >> { %v472_v40 = vmul.f32 1.442695, %v471_v39 }
  0x1c   : >> { %2127 = vpow2.f32 %v472_v40 }
  0x22   : >> { %v2128_v41 = vpop.eup %2127 }
  0x23   : >> { %v474_v42 = vadd.f32 1.0, %v2128_v41  ;;  %v477_v43 = vmul.f32 -0.5, %v2128_v41  ;;  %v480_v47 = vand.u32 2147483647, %v2128_v41 }
  0x25   : >> { %2129 = vlog2.f32 %v474_v42  ;;  %v478_v44 = vadd.f32 1.0, %v477_v43  ;;  %vm481_vm0 = vcmp.lt.f32.partialorder %v480_v47, 0.0004427343 }
  0x27   : >> { %v479_v49 = vmul.f32 %v2128_v41, %v478_v44 }
  0x2b   : >> { %v2130_v46 = vpop.eup %2129 }
  0x2c   : >> { %v476_v48 = vmul.f32 0.6931472, %v2130_v46 }
  0x2e   : >> { %v482_v51 = vsel %vm481_vm0, %v479_v49, %v476_v48 }
  0x2f   : >> { %v2641_v53 = vadd.f32 %v482_v51, %v469_v50 }
  0x31   : >> { %v2646_v54 = vperm.slane %v2641_v53, 0  ;;  %v2656_v58 = vperm.slane %v2641_v53, 1  ;;  %v2663_v60 = vperm.slane %v2641_v53, 2  ;;  %v2682_v38 = vmul.f32 %v485_v17, %v2641_v53 }
  0x32   : >> { %v3415_v17 = vmov 6  }
  0x33   : >> { %v560_v56 = vmul.f32 %v2646_v54, %v2439_v2  ;;  %v720_v59 = vmul.f32 %v2656_v58, %v2439_v2  ;;  %v863_v36 = vmul.f32 %v2663_v60, %v2439_v2  ;;  %v2688_v41 = vperm.slane %v2682_v38, 1 }
  0x34   : >> { %v2694_v43 = vperm.slane %v2682_v38, 0  ;;  %v558_v48 = vmul.f32 %v2646_v54, %v2429_v0  ;;  %v559_v51 = vmul.f32 %v2646_v54, %v2434_v1 }
  0x35   : >> { %v570_v57 = vmul.f32 1.442695, %v560_v56  ;;  %v873_v40 = vmul.f32 1.442695, %v863_v36 }
  0x37   : >> { %2131 = vpow2.f32 %v570_v57 }
  0x3d   : >> { %v2132_v39 = vpop.eup %2131 }
  0x54   : >> { %525 = vxpose.xlu0.b32.start.end [1/1] (short) (narrow) %v524_v19, 64  ;;  %v730_v19 = vmul.f32 1.442695, %v720_v59 }
  0x56   : >> { %2133 = vpow2.f32 %v730_v19  ;;  %v568_v19 = vmul.f32 1.442695, %v559_v51  ;;  %v721_v51 = vmul.f32 %v2656_v58, %v2444_v3 }
  0x57   : >> { %2135 = vpow2.f32 %v873_v40  ;;  %v561_v40 = vmul.f32 %v2646_v54, %v2444_v3 }
  0x5c   : >> { %v2134_v50 = vpop.eup %2133 }
  0x5d   : >> { %v2136_v59 = vpop.eup %2135 }
  0xb8   : >> { %v2559_v20 = vpop.trf.xlu0 }
  0xb9   : >> { %592 = vperm.xlu1 %2091, %v2559_v20  }
  0xbb   : >> { %2097 = vset.pattern.permute.xlu0 %v2361_v25 }
  0xc0   : >> { %v2562_v21 = vpop.trf.xlu0 }
  0xc8   : >> { %v2564_v22 = vpop.trf.xlu0 }
  0xd0   : >> { %v2566_v23 = vpop.trf.xlu0 }
  0xd8   : >> { %v2568_v24 = vpop.trf.xlu0 }
  0xe0   : >> { %v2571_v26 = vpop.trf.xlu0 }
  0xe8   : >> { %v2573_v27 = vpop.trf.xlu0 }
  0xf0   : >> { %v2575_v28 = vpop.trf.xlu0 }
  0xf8   : >> { %v2577_v29 = vpop.trf.xlu0 }
  0xf9   : >> { %649 = vperm.xlu1 %2091, %v2577_v29  }
  0xfa   : >> { %759 = vperm.xlu0 %2097, %v2564_v22  }
 0x100   : >> { %v2581_v30 = vpop.trf.xlu0 }
 0x101   : >> { %2092 = vset.pattern.permute.xlu1 %v2361_v25  ;;  %654 = vperm.xlu2 %2094, %v2581_v30  }
 0x102   : >> { %751 = vperm.xlu1 %2092, %v2559_v20   ;;  %2114 = vset.pattern.permute.xlu0 %v3421_v31 }
 0x108   : >> { %v2587_v32 = vpop.trf.xlu0 }
 0x109   : >> { %2095 = vset.pattern.permute.xlu2 %v2361_v25 }
 0x10a   : >> { %2093 = vset.pattern.permute.xlu1 %v2360_v18  ;;  %755 = vperm.xlu2 %2095, %v2562_v21  }
 0x10b   : >> { %597 = vperm.xlu1 %2093, %v2562_v21  }
 0x110   : >> { %v2593_v33 = vpop.trf.xlu0 }
 0x112   : >> { %2096 = vset.pattern.permute.xlu2 %v2360_v18 }
 0x113   : >> { %602 = vperm.xlu2 %2096, %v2564_v22   ;;  %659 = vperm.xlu1 %2093, %v2587_v32  }
 0x118   : >> { %v2598_v34 = vpop.trf.xlu0 }
 0x11b   : >> { %2098 = vset.pattern.permute.xlu2 %v2361_v25  ;;  %2099 = vset.pattern.permute.xlu1 %v2361_v25 }
 0x11c   : >> { %800 = vperm.xlu2 %2098, %v2577_v29   ;;  %804 = vperm.xlu1 %2099, %v2581_v30  }
 0x120   : >> { %v2604_v35 = vpop.trf.xlu0 }
 0x121   : >> { %1106 = vperm.xlu0 %2114, %v2604_v35  }
 0x124   : >> { %808 = vperm.xlu2 %2098, %v2587_v32   ;;  %763 = vperm.xlu1 %2099, %v2566_v23  }
 0x128   : >> { %v2639_v52 = vpop.trf.xlu0 }
 0x129   : >> { %2117 = vset.pattern.permute.xlu0 %v3419_v37 }
 0x12a   : >> { %1188 = vperm.xlu0 %2117, %v2564_v22  }
 0x12b   : >> { %v593_v62 = vpop.permute.xlu1 %592 }
 0x12c   : >> { %2100 = vset.pattern.permute.xlu2 %v2360_v18  ;;  %812 = vperm.xlu1 %2099, %v2593_v33  }
 0x12d   : >> { %607 = vperm.xlu2 %2100, %v2566_v23  }
 0x130   : >> { %v2673_v61 = vpop.trf.xlu0 }
 0x132   : >> { %1208 = vperm.xlu0 %2117, %v2575_v28  }
 0x134   : >> { %2101 = vset.pattern.permute.xlu1 %v2360_v18 }
 0x135   : >> { %612 = vperm.xlu1 %2101, %v2568_v24   ;;  %664 = vperm.xlu2 %2100, %v2593_v33  }
 0x13a   : >> { %1237 = vperm.xlu0 %2117, %v2587_v32  }
 0x13d   : >> { %2102 = vset.pattern.permute.xlu2 %v2361_v25  ;;  %669 = vperm.xlu1 %2101, %v2598_v34  }
 0x13e   : >> { %767 = vperm.xlu2 %2102, %v2568_v24  }
 0x142   : >> { %1249 = vperm.xlu0 %2117, %v2604_v35  }
 0x145   : >> { %2104 = vset.pattern.permute.xlu1 %v2361_v25 }
 0x146   : >> { %816 = vperm.xlu2 %2102, %v2598_v34   ;;  %771 = vperm.xlu1 %2104, %v2571_v26  }
 0x14a   : >> { %2118 = vset.pattern.permute.xlu0 %v3417_v45  ;;  %v631_v45 = vmul.f32 %v2694_v43, %v593_v62 }
 0x14b   : >> { %1323 = vperm.xlu0 %2118, %v2559_v20  }
 0x14e   : >> { %2103 = vset.pattern.permute.xlu2 %v2360_v18  ;;  %2105 = vset.pattern.permute.xlu1 %v2360_v18 }
 0x14f   : >> { %617 = vperm.xlu2 %2103, %v2571_v26   ;;  %622 = vperm.xlu1 %2105, %v2573_v27  }
 0x153   : >> { %1343 = vperm.xlu0 %2118, %v2571_v26  }
 0x157   : >> { %674 = vperm.xlu2 %2103, %v2604_v35   ;;  %679 = vperm.xlu1 %2105, %v2639_v52  }
 0x15b   : >> { %1372 = vperm.xlu0 %2118, %v2577_v29   ;;  %v2649_v55 = vpop.permute.xlu2 %654 }
 0x15f   : >> { %2106 = vset.pattern.permute.xlu2 %v2361_v25  ;;  %2108 = vset.pattern.permute.xlu1 %v2361_v25 }
 0x160   : >> { %775 = vperm.xlu2 %2106, %v2573_v27   ;;  %779 = vperm.xlu1 %2108, %v2575_v28  }
 0x163   : >> { %1384 = vperm.xlu0 %2118, %v2593_v33  }
 0x164   : >> { %v2676_v63 = vpop.permute.xlu2 %755 }
 0x168   : >> { %2107 = vset.pattern.permute.xlu2 %v2360_v18  ;;  %820 = vperm.xlu1 %2108, %v2604_v35   ;;  %v584_v18 = vmul.f32 %v2346_v14, %v2132_v39  ;;  %v566_v14 = vmul.f32 1.442695, %v558_v48  ;;  %v2366_v48 = vmov 2  }
 0x169   : >> { %627 = vperm.xlu2 %2107, %v2575_v28  }
 0x16a   : >> { %2137 = vpow2.f32 %v566_v14 }
 0x16b   : >> { %v2690_v42 = vpop.permute.xlu1 %649  ;;  %1396 = vperm.xlu0 %2118, %v2639_v52   ;;  %2139 = vpow2.f32 %v568_v19 }
 0x16c   : >> { %v760_v44 = vpop.permute.xlu0 %759 }
 0x16d   : >> { %v785_v46 = vmul.f32 %v2688_v41, %v760_v44  ;;  %v603_v47 = vpop.permute.xlu2 %602 }
 0x16e   : >> { %v633_v49 = vmul.f32 %v2694_v43, %v603_v47 }
 0x170   : >> { %v2703_v56 = vadd.f32 %v633_v49, %v584_v18  ;;  %828 = vperm.xlu1 %2108, %v2673_v61   ;;  %v718_v18 = vmul.f32 %v2656_v58, %v2429_v0  ;;  %v719_v49 = vmul.f32 %v2656_v58, %v2434_v1  ;;  %v2138_v14 = vpop.eup %2137 }
 0x171   : >> { %684 = vperm.xlu2 %2107, %v2673_v61  }
 0x172   : >> { %v744_v57 = vmul.f32 %v2134_v50, %v2703_v56  ;;  %v726_v50 = vmul.f32 1.442695, %v718_v18 }
 0x173   : >> { %2122 = vset.pattern.permute.xlu0 %v3415_v17 }
 0x174   : >> { %v752_v36 = vpop.permute.xlu1 %751  ;;  %1470 = vperm.xlu0 %2122, %v2562_v21   ;;  %v2710_v39 = vadd.f32 %v785_v46, %v744_v57  ;;  %v572_v46 = vmul.f32 1.442695, %v561_v40  ;;  %v728_v57 = vmul.f32 1.442695, %v719_v49  ;;  %v732_v40 = vmul.f32 1.442695, %v721_v51 }
 0x176   : >> { %v801_v44 = vpop.permute.xlu2 %800  ;;  %v2717_v47 = vmul.f32 %v2136_v59, %v2710_v39  ;;  %v2140_v59 = vpop.eup %2139  ;;  %2141 = vpow2.f32 %v572_v46 }
 0x177   : >> { %2143 = vpow2.f32 %v726_v50  ;;  %v583_v18 = vmul.f32 %v2350_v15, %v2140_v59 }
 0x178   : >> { %2111 = vset.pattern.permute.xlu1 %v2366_v48  ;;  %2145 = vpow2.f32 %v728_v57 }
 0x179   : >> { %898 = vperm.xlu1 %2111, %v2562_v21   ;;  %2109 = vset.pattern.permute.xlu2 %v2361_v25  ;;  %v582_v25 = vmul.f32 %v2354_v16, %v2138_v14  ;;  %2147 = vpow2.f32 %v732_v40  ;;  %v783_v16 = vmul.f32 %v2688_v41, %v752_v36 }
 0x17a   : >> { %824 = vperm.xlu2 %2109, %v2639_v52  }
 0x17b   : >> { %v639_v49 = vadd.f32 %v631_v45, %v582_v25 }
 0x17c   : >> { %1490 = vperm.xlu0 %2122, %v2573_v27   ;;  %v2142_v31 = vpop.eup %2141 }
 0x17d   : >> { %v598_v19 = vpop.permute.xlu1 %597  ;;  %v2144_v46 = vpop.eup %2143  ;;  %v585_v15 = vmul.f32 %v2342_v13, %v2142_v31  ;;  %v687_v25 = vmul.f32 %v2690_v42, %v639_v49  ;;  %v864_v13 = vmul.f32 %v2663_v60, %v2444_v3  ;;  %v784_v31 = vmul.f32 %v2688_v41, %v2676_v63 }
 0x17e   : >> { %v809_v17 = vpop.permute.xlu2 %808  ;;  %v632_v37 = vmul.f32 %v2694_v43, %v598_v19  ;;  %v2146_v51 = vpop.eup %2145  ;;  %v742_v14 = vmul.f32 %v2144_v46, %v639_v49 }
 0x17f   : >> { %v2148_v45 = vpop.eup %2147  ;;  %v833_v63 = vmul.f32 %v809_v17, %v2710_v39 }
 0x180   : >> { %v640_v50 = vadd.f32 %v632_v37, %v583_v18  ;;  %v2738_v19 = vadd.f32 %v783_v16, %v742_v14  ;;  %v875_v16 = vmul.f32 1.442695, %v864_v13 }
 0x181   : >> { %906 = vperm.xlu1 %2111, %v2566_v23  }
 0x182   : >> { %2110 = vset.pattern.permute.xlu2 %v2366_v48  ;;  %v688_v59 = vmul.f32 %v2649_v55, %v640_v50  ;;  %v743_v37 = vmul.f32 %v2146_v51, %v640_v50  ;;  %v831_v46 = vmul.f32 %v801_v44, %v2738_v19  ;;  %2149 = vpow2.f32 %v875_v16 }
 0x183   : >> { %894 = vperm.xlu2 %2110, %v2559_v20  }
 0x184   : >> { %1519 = vperm.xlu0 %2122, %v2581_v30   ;;  %v697_v55 = vsel %vm695_vm1, %v688_v59, 0.0  ;;  %v2751_v42 = vadd.f32 %v784_v31, %v743_v37  ;;  %v842_v37 = vsel %vm695_vm1, %v833_v63, 0.0  ;;  %v563_v31 = vmul.f32 %v2646_v54, %v2454_v5 }
 0x185   : >> { %v660_v62 = vpop.permute.xlu1 %659  ;;  %v722_v63 = vmul.f32 %v2656_v58, %v2449_v4 }
 0x186   : >> { %v689_v36 = vmul.f32 %v660_v62, %v2703_v56  ;;  %v696_v56 = vsel %vm695_vm1, %v687_v25, 0.0 }
 0x187   : >> { %v608_v57 = vpop.permute.xlu2 %607  ;;  %v698_v62 = vadd.f32 %v697_v55, %v696_v56 }
 0x188   : >> { %v634_v48 = vmul.f32 %v2694_v43, %v608_v57  ;;  %v699_v49 = vsel %vm695_vm1, %v689_v36, 0.0  ;;  %v839_v57 = vsel %vm695_vm1, %v831_v46, 0.0  ;;  %v562_v36 = vmul.f32 %v2646_v54, %v2449_v4  ;;  %v2150_v55 = vpop.eup %2149 }
 0x189   : >> { %914 = vperm.xlu1 %2111, %v2571_v26   ;;  %v700_v59 = vadd.f32 %v699_v49, %v698_v62  ;;  %v2776_v49 = vperm.slane %v2682_v38, 4  ;;  %v576_v62 = vmul.f32 1.442695, %v563_v31 }
 0x18a   : >> { %v642_v40 = vadd.f32 %v634_v48, %v585_v15  ;;  %v574_v16 = vmul.f32 1.442695, %v562_v36 }
 0x18b   : >> { %902 = vperm.xlu2 %2110, %v2564_v22  }
 0x18c   : >> { %1531 = vperm.xlu0 %2122, %v2598_v34   ;;  %v745_v18 = vmul.f32 %v2148_v45, %v642_v40  ;;  %2151 = vpow2.f32 %v574_v16 }
 0x18d   : >> { %2153 = vpow2.f32 %v576_v62 }
 0x18e   : >> { %v805_v50 = vpop.permute.xlu1 %804 }
 0x18f   : >> { %v832_v51 = vmul.f32 %v805_v50, %v2751_v42  ;;  %v665_v15 = vpop.permute.xlu2 %664 }
 0x190   : >> { %v690_v14 = vmul.f32 %v665_v15, %v642_v40  ;;  %v3423_v15 = vmov 7  }
 0x191   : >> { %v840_v44 = vsel %vm695_vm1, %v832_v51, 0.0  ;;  %922 = vperm.xlu1 %2111, %v2575_v28  }
 0x192   : >> { %v841_v48 = vadd.f32 %v840_v44, %v839_v57  ;;  %v701_v45 = vsel %vm695_vm1, %v690_v14, 0.0  ;;  %v2152_v31 = vpop.eup %2151 }
 0x193   : >> { %v2762_v25 = vadd.f32 %v701_v45, %v700_v59  ;;  %910 = vperm.xlu2 %2110, %v2568_v24   ;;  %v2765_v17 = vpop.permute.xlu0 %1106  ;;  %v865_v45 = vmul.f32 %v2663_v60, %v2449_v4  ;;  %v2154_v16 = vpop.eup %2153 }
 0x194   : >> { %1543 = vperm.xlu0 %2122, %v2673_v61   ;;  %v843_v39 = vadd.f32 %v842_v37, %v841_v48  ;;  %v734_v48 = vmul.f32 1.442695, %v722_v63  ;;  %v586_v63 = vmul.f32 %v2338_v12, %v2152_v31  ;;  %v866_v31 = vmul.f32 %v2663_v60, %v2454_v5 }
 0x196   : >> { %v764_v40 = vpop.permute.xlu1 %763  ;;  %2155 = vpow2.f32 %v734_v48 }
 0x197   : >> { %v786_v13 = vmul.f32 %v2688_v41, %v764_v40 }
 0x198   : >> { %v768_v46 = vpop.permute.xlu2 %767 }
 0x199   : >> { %v787_v56 = vmul.f32 %v2688_v41, %v768_v46  ;;  %947 = vperm.xlu1 %2111, %v2581_v30   ;;  %v794_v50 = vadd.f32 %v786_v13, %v745_v18  ;;  %v723_v18 = vmul.f32 %v2656_v58, %v2454_v5 }
 0x19b   : >> { %918 = vperm.xlu2 %2110, %v2573_v27   ;;  %v2781_v51 = vmul.f32 %v2150_v55, %v794_v50  ;;  %v736_v40 = vmul.f32 1.442695, %v723_v18  ;;  %v877_v55 = vmul.f32 1.442695, %v865_v45 }
 0x19c   : >> { %2126 = vset.pattern.permute.xlu0 %v3423_v15  ;;  %v1189_v14 = vpop.permute.xlu0 %1188  ;;  %v2156_v18 = vpop.eup %2155  ;;  %v879_v15 = vmul.f32 1.442695, %v866_v31 }
 0x19d   : >> { %v2785_v57 = vmul.f32 %v2776_v49, %v1189_v14  ;;  %1617 = vperm.xlu0 %2126, %v2564_v22   ;;  %2157 = vpow2.f32 %v736_v40 }
 0x19e   : >> { %v813_v59 = vpop.permute.xlu1 %812  ;;  %2159 = vpow2.f32 %v877_v55 }
 0x19f   : >> { %v834_v44 = vmul.f32 %v813_v59, %v794_v50  ;;  %2161 = vpow2.f32 %v879_v15  ;;  %v867_v15 = vmul.f32 %v2663_v60, %v2459_v6 }
 0x1a0   : >> { %v817_v37 = vpop.permute.xlu2 %816 }
 0x1a1   : >> { %v844_v36 = vsel %vm695_vm1, %v834_v44, 0.0  ;;  %955 = vperm.xlu1 %2111, %v2593_v33  }
 0x1a2   : >> { %v845_v13 = vadd.f32 %v844_v36, %v843_v39  ;;  %v587_v39 = vmul.f32 %v2334_v11, %v2154_v16 }
 0x1a3   : >> { %943 = vperm.xlu2 %2110, %v2577_v29   ;;  %v2158_v45 = vpop.eup %2157 }
 0x1a4   : >> { %v1209_v46 = vpop.permute.xlu0 %1208  ;;  %v2160_v55 = vpop.eup %2159 }
 0x1a5   : >> { %v2796_v50 = vmul.f32 %v2776_v49, %v1209_v46  ;;  %1666 = vperm.xlu0 %2126, %v2587_v32  }
 0x1a7   : >> { %v613_v62 = vpop.permute.xlu1 %612 }
 0x1a8   : >> { %v635_v14 = vmul.f32 %v2694_v43, %v613_v62  ;;  %v564_v62 = vmul.f32 %v2646_v54, %v2459_v6 }
 0x1a9   : >> { %v618_v59 = vpop.permute.xlu2 %617  ;;  %963 = vperm.xlu1 %2111, %v2604_v35  }
 0x1aa   : >> { %v636_v44 = vmul.f32 %v2694_v43, %v618_v59  ;;  %v643_v48 = vadd.f32 %v635_v14, %v586_v63 }
 0x1ab   : >> { %951 = vperm.xlu2 %2110, %v2587_v32  }
 0x1ac   : >> { %v2805_v36 = vpop.permute.xlu0 %1237  ;;  %v746_v40 = vmul.f32 %v2156_v18, %v643_v48  ;;  %v644_v12 = vadd.f32 %v636_v44, %v587_v39  ;;  %v565_v39 = vmul.f32 %v2646_v54, %v2464_v7 }
 0x1ad   : >> { %3428 = vst [vmem:[#allocation3_spill] sm:$0xff] %v2805_v36  ;;  %1633 = vperm.xlu0 %2126, %v2573_v27  }
 0x1ae   : >> { %v795_v11 = vadd.f32 %v787_v56, %v746_v40  ;;  %v747_v46 = vmul.f32 %v2158_v45, %v644_v12  ;;  %v580_v54 = vmul.f32 1.442695, %v565_v39 }
 0x1af   : >> { %v670_v16 = vpop.permute.xlu1 %669 }
 0x1b0   : >> { %v691_v63 = vmul.f32 %v670_v16, %v643_v48  ;;  %v835_v14 = vmul.f32 %v817_v37, %v795_v11  ;;  %v2812_v59 = vmul.f32 %v2160_v55, %v795_v11  ;;  %v578_v48 = vmul.f32 1.442695, %v564_v62  ;;  %v2162_v62 = vpop.eup %2161 }
 0x1b1   : >> { %v675_v8 = vpop.permute.xlu2 %674  ;;  %971 = vperm.xlu1 %2111, %v2673_v61   ;;  %v3430_v11 = vmov 3  }
 0x1b2   : >> { %v703_v18 = vsel %vm695_vm1, %v691_v63, 0.0  ;;  %v692_v44 = vmul.f32 %v675_v8, %v644_v12  ;;  %v846_v56 = vsel %vm695_vm1, %v835_v14, 0.0  ;;  %v724_v8 = vmul.f32 %v2656_v58, %v2459_v6 }
 0x1b3   : >> { %v704_v45 = vadd.f32 %v703_v18, %v2762_v25  ;;  %959 = vperm.xlu2 %2110, %v2598_v34   ;;  %v2821_v37 = vadd.f32 %v846_v56, %v845_v13  ;;  %2163 = vpow2.f32 %v578_v48  ;;  %v725_v25 = vmul.f32 %v2656_v58, %v2464_v7 }
 0x1b4   : >> { %v705_v40 = vsel %vm695_vm1, %v692_v44, 0.0  ;;  %v2824_v31 = vpop.permute.xlu0 %1249  ;;  %2165 = vpow2.f32 %v580_v54  ;;  %v738_v16 = vmul.f32 1.442695, %v724_v8  ;;  %v2837_v14 = vperm.slane %v2682_v38, 5 }
 0x1b5   : >> { %3429 = vst [vmem:[#allocation4_spill] sm:$0xff] %v2824_v31  ;;  %v706_v55 = vadd.f32 %v705_v40, %v704_v45  ;;  %1678 = vperm.xlu0 %2126, %v2604_v35   ;;  %v740_v18 = vmul.f32 1.442695, %v725_v25  ;;  %v881_v45 = vmul.f32 1.442695, %v867_v15 }
 0x1b6   : >> { %3431 = vst [vmem:[#allocation5_spill] sm:$0xff] %v2837_v14  ;;  %2167 = vpow2.f32 %v738_v16 }
 0x1b7   : >> { %2169 = vpow2.f32 %v740_v18 }
 0x1b8   : >> { %v772_v12 = vpop.permute.xlu1 %771  ;;  %2171 = vpow2.f32 %v881_v45  ;;  %v868_v45 = vmul.f32 %v2663_v60, %v2464_v7 }
 0x1b9   : >> { %v788_v13 = vmul.f32 %v2688_v41, %v772_v12  ;;  %2113 = vset.pattern.permute.xlu1 %v3430_v11  ;;  %v2164_v44 = vpop.eup %2163 }
 0x1ba   : >> { %v776_v63 = vpop.permute.xlu2 %775  ;;  %1041 = vperm.xlu1 %2113, %v2562_v21   ;;  %v2166_v54 = vpop.eup %2165  ;;  %v588_v8 = vmul.f32 %v2330_v10, %v2164_v44 }
 0x1bb   : >> { %v789_v39 = vmul.f32 %v2688_v41, %v776_v63  ;;  %967 = vperm.xlu2 %2110, %v2639_v52   ;;  %v2841_v58 = vadd.f32 %v788_v13, %v747_v46  ;;  %v589_v25 = vmul.f32 %v2326_v9, %v2166_v54 }
 0x1bc   : >> { %v2168_v13 = vpop.eup %2167 }
 0x1bd   : >> { %v1324_v56 = vpop.permute.xlu0 %1323  ;;  %v2844_v48 = vmul.f32 %v2162_v62, %v2841_v58  ;;  %v2170_v63 = vpop.eup %2169 }
 0x1be   : >> { %v2847_v40 = vmul.f32 %v2837_v14, %v1324_v56  ;;  %v2172_v9 = vpop.eup %2171 }
 0x1c1   : >> { %v623_v12 = vpop.permute.xlu1 %622 }
 0x1c2   : >> { %v637_v46 = vmul.f32 %v2694_v43, %v623_v12  ;;  %1049 = vperm.xlu1 %2113, %v2566_v23  }
 0x1c3   : >> { %v628_v16 = vpop.permute.xlu2 %627  ;;  %2112 = vset.pattern.permute.xlu2 %v3430_v11 }
 0x1c4   : >> { %v638_v15 = vmul.f32 %v2694_v43, %v628_v16  ;;  %1037 = vperm.xlu2 %2112, %v2559_v20   ;;  %v645_v62 = vadd.f32 %v637_v46, %v588_v8  ;;  %v883_v8 = vmul.f32 1.442695, %v868_v45 }
 0x1c5   : >> { %v1344_v18 = vpop.permute.xlu0 %1343 }
 0x1c6   : >> { %v2857_v10 = vmul.f32 %v2837_v14, %v1344_v18  ;;  %v646_v44 = vadd.f32 %v638_v15, %v589_v25  ;;  %v748_v56 = vmul.f32 %v2168_v13, %v645_v62  ;;  %v861_v13 = vmul.f32 %v2663_v60, %v2429_v0 }
 0x1c7   : >> { %2173 = vpow2.f32 %v883_v8 }
 0x1c8   : >> { %v797_v54 = vadd.f32 %v789_v39, %v748_v56  ;;  %v749_v12 = vmul.f32 %v2170_v63, %v646_v44  ;;  %v2869_v39 = vperm.slane %v2641_v53, 3 }
 0x1c9   : >> { %v680_v31 = vpop.permute.xlu1 %679 }
 0x1ca   : >> { %v693_v11 = vmul.f32 %v680_v31, %v645_v62  ;;  %1057 = vperm.xlu1 %2113, %v2571_v26   ;;  %v2862_v43 = vmul.f32 %v2172_v9, %v797_v54  ;;  %v869_v62 = vmul.f32 1.442695, %v861_v13  ;;  %v1004_v63 = vmul.f32 %v2869_v39, %v2429_v0 }
 0x1cb   : >> { %v685_v46 = vpop.permute.xlu2 %684  ;;  %v1006_v8 = vmul.f32 %v2869_v39, %v2439_v2 }
 0x1cc   : >> { %v707_v16 = vsel %vm695_vm1, %v693_v11, 0.0  ;;  %v694_v18 = vmul.f32 %v685_v46, %v646_v44  ;;  %1045 = vperm.xlu2 %2112, %v2564_v22   ;;  %2175 = vpow2.f32 %v869_v62  ;;  %v1012_v46 = vmul.f32 1.442695, %v1004_v63 }
 0x1cd   : >> { %v708_v25 = vadd.f32 %v707_v16, %v706_v55  ;;  %v2174_v55 = vpop.eup %2173  ;;  %v1016_v62 = vmul.f32 1.442695, %v1006_v8  ;;  %v1008_v8 = vmul.f32 %v2869_v39, %v2449_v4 }
 0x1ce   : >> { %v709_v31 = vsel %vm695_vm1, %v694_v18, 0.0  ;;  %2177 = vpow2.f32 %v1012_v46 }
 0x1cf   : >> { %v710_v15 = vadd.f32 %v709_v31, %v708_v25  ;;  %v2883_v25 = vperm.slane %v2682_v38, 2  ;;  %2179 = vpow2.f32 %v1016_v62 }
 0x1d1   : >> { %v711_v63 = vrot.slane %v710_v15, 4 }
 0x1d2   : >> { %v780_v56 = vpop.permute.xlu1 %779  ;;  %1065 = vperm.xlu1 %2113, %v2575_v28  }
 0x1d3   : >> { %v790_v44 = vmul.f32 %v2688_v41, %v780_v56  ;;  %v2176_v41 = vpop.eup %2175 }
 0x1d4   : >> { %1053 = vperm.xlu2 %2112, %v2568_v24   ;;  %v825_v45 = vpop.permute.xlu2 %824 }
 0x1d5   : >> { %v837_v9 = vmul.f32 %v825_v45, %v797_v54  ;;  %v798_v11 = vadd.f32 %v790_v44, %v749_v12  ;;  %v862_v54 = vmul.f32 %v2663_v60, %v2434_v1  ;;  %v2178_v45 = vpop.eup %2177  ;;  %v1005_v60 = vmul.f32 %v2869_v39, %v2434_v1 }
 0x1d7   : >> { %v2877_v16 = vmul.f32 %v2174_v55, %v798_v11  ;;  %v885_v55 = vmul.f32 %v2176_v41, %v2738_v19  ;;  %v850_v46 = vsel %vm695_vm1, %v837_v9, 0.0  ;;  %v1014_v9 = vmul.f32 1.442695, %v1005_v60 }
 0x1da   : >> { %v821_v18 = vpop.permute.xlu1 %820  ;;  %1090 = vperm.xlu1 %2113, %v2581_v30  }
 0x1db   : >> { %v836_v13 = vmul.f32 %v821_v18, %v2841_v58  ;;  %v871_v58 = vmul.f32 1.442695, %v862_v54 }
 0x1dc   : >> { %1061 = vperm.xlu2 %2112, %v2573_v27  }
 0x1dd   : >> { %v848_v12 = vsel %vm695_vm1, %v836_v13, 0.0  ;;  %v895_v31 = vpop.permute.xlu2 %894  ;;  %v712_v13 = vadd.f32 %v711_v63, %v710_v15  ;;  %2181 = vpow2.f32 %v871_v58  ;;  %v2180_v15 = vpop.eup %2179  ;;  %v1007_v63 = vmul.f32 %v2869_v39, %v2444_v3 }
 0x1de   : >> { %v849_v56 = vadd.f32 %v848_v12, %v2821_v37  ;;  %v926_v44 = vmul.f32 %v2883_v25, %v895_v31  ;;  %v1020_v31 = vmul.f32 1.442695, %v1008_v8  ;;  %2183 = vpow2.f32 %v1014_v9 }
 0x1df   : >> { %v713_v62 = vrot.slane %v712_v13, 2 }
 0x1e0   : >> { %v851_v18 = vadd.f32 %v850_v46, %v849_v56  ;;  %v2896_v14 = vadd.f32 %v926_v44, %v885_v55  ;;  %2185 = vpow2.f32 %v1020_v31  ;;  %v1010_v46 = vmul.f32 %v2869_v39, %v2459_v6 }
 0x1e1   : >> { %v714_v58 = vadd.f32 %v713_v62, %v712_v13 }
 0x1e2   : >> { %1098 = vperm.xlu1 %2113, %v2593_v33   ;;  %v829_v37 = vpop.permute.xlu1 %828  ;;  %v2902_v19 = vmul.f32 %v2178_v45, %v2896_v14  ;;  %v1024_v31 = vmul.f32 1.442695, %v1010_v46  ;;  %v3432_v46 = vmov 4  }
 0x1e3   : >> { %v838_v41 = vmul.f32 %v829_v37, %v798_v11  ;;  %v2182_v45 = vpop.eup %2181  ;;  %v1018_v37 = vmul.f32 1.442695, %v1007_v63 }
 0x1e4   : >> { %1086 = vperm.xlu2 %2112, %v2577_v29  }
 0x1e5   : >> { %v852_v54 = vsel %vm695_vm1, %v838_v41, 0.0  ;;  %v903_v12 = vpop.permute.xlu2 %902  ;;  %2187 = vpow2.f32 %v1018_v37 }
 0x1e6   : >> { %v853_v56 = vadd.f32 %v852_v54, %v851_v18  ;;  %v928_v44 = vmul.f32 %v2883_v25, %v903_v12  ;;  %v2184_v54 = vpop.eup %2183  ;;  %2189 = vpow2.f32 %v1024_v31 }
 0x1e8   : >> { %v854_v55 = vrot.slane %v853_v56, 4  ;;  %v2910_v11 = vadd.f32 %v928_v44, %v2717_v47  ;;  %v886_v47 = vmul.f32 %v2182_v45, %v2751_v42  ;;  %v715_v44 = vrot.slane %v714_v58, 1 }
 0x1ea   : >> { %v855_v60 = vadd.f32 %v854_v55, %v853_v56  ;;  %1110 = vperm.xlu1 %2113, %v2639_v52   ;;  %v2916_v18 = vmul.f32 %v2180_v15, %v2910_v11  ;;  %v2186_v55 = vpop.eup %2185  ;;  %v1009_v15 = vmul.f32 %v2869_v39, %v2454_v5  ;;  %v716_v42 = vadd.f32 %v715_v44, %v714_v58 }
 0x1eb   : >> { %v899_v8 = vpop.permute.xlu1 %898  ;;  %v1011_v44 = vmul.f32 %v2869_v39, %v2464_v7 }
 0x1ec   : >> { %v856_v41 = vrot.slane %v855_v60, 2  ;;  %v927_v9 = vmul.f32 %v2883_v25, %v899_v8  ;;  %1094 = vperm.xlu2 %2112, %v2587_v32  }
 0x1ed   : >> { %v911_v12 = vpop.permute.xlu2 %910 }
 0x1ee   : >> { %v857_v13 = vadd.f32 %v856_v41, %v855_v60  ;;  %v930_v62 = vmul.f32 %v2883_v25, %v911_v12  ;;  %v935_v56 = vadd.f32 %v927_v9, %v886_v47  ;;  %v1022_v9 = vmul.f32 1.442695, %v1009_v15 }
 0x1f0   : >> { %v858_v63 = vrot.slane %v857_v13, 1  ;;  %v938_v8 = vadd.f32 %v930_v62, %v2812_v59  ;;  %v2925_v36 = vmul.f32 %v2184_v54, %v935_v56  ;;  %v2188_v59 = vpop.eup %2187  ;;  %2191 = vpow2.f32 %v1022_v9 }
 0x1f1   : >> { %v2190_v31 = vpop.eup %2189 }
 0x1f2   : >> { %v859_v45 = vadd.f32 %v858_v63, %v857_v13  ;;  %2115 = vset.pattern.permute.xlu1 %v3432_v46  ;;  %v2928_v60 = vmul.f32 %v2186_v55, %v938_v8  ;;  %v1026_v63 = vmul.f32 1.442695, %v1011_v44 }
 0x1f3   : >> { %1180 = vperm.xlu1 %2115, %v2559_v20   ;;  %v907_v41 = vpop.permute.xlu1 %906 }
 0x1f4   : >> { %v2931_v47 = vsel %vm1718_vm2, %v716_v42, %v859_v45  ;;  %v929_v37 = vmul.f32 %v2883_v25, %v907_v41  ;;  %1102 = vperm.xlu2 %2112, %v2598_v34   ;;  %2193 = vpow2.f32 %v1026_v63 }
 0x1f5   : >> { %v919_v54 = vpop.permute.xlu2 %918 }
 0x1f6   : >> { %v932_v12 = vmul.f32 %v2883_v25, %v919_v54  ;;  %v937_v58 = vadd.f32 %v929_v37, %v2781_v51  ;;  %v2192_v51 = vpop.eup %2191 }
 0x1f8   : >> { %v940_v13 = vadd.f32 %v932_v12, %v2862_v43  ;;  %v2940_v62 = vmul.f32 %v2188_v59, %v937_v58 }
 0x1fa   : >> { %v2942_v55 = vmul.f32 %v2190_v31, %v940_v13  ;;  %v2194_v59 = vpop.eup %2193 }
 0x1fb   : >> { %1192 = vperm.xlu1 %2115, %v2566_v23   ;;  %v915_v15 = vpop.permute.xlu1 %914 }
 0x1fc   : >> { %v931_v42 = vmul.f32 %v2883_v25, %v915_v15  ;;  %1114 = vperm.xlu2 %2112, %v2673_v61  }
 0x1fd   : >> { %v944_v45 = vpop.permute.xlu2 %943 }
 0x1fe   : >> { %v974_v41 = vmul.f32 %v944_v45, %v2896_v14  ;;  %v939_v39 = vadd.f32 %v931_v42, %v2844_v48  ;;  %v2964_v42 = vperm.slane %v2641_v53, 4 }
 0x200   : >> { %v2949_v43 = vmul.f32 %v2192_v51, %v939_v39  ;;  %v1147_v45 = vmul.f32 %v2964_v42, %v2429_v0 }
 0x203   : >> { %1200 = vperm.xlu1 %2115, %v2571_v26   ;;  %v923_v9 = vpop.permute.xlu1 %922 }
 0x204   : >> { %v933_v37 = vmul.f32 %v2883_v25, %v923_v9  ;;  %2116 = vset.pattern.permute.xlu2 %v3432_v46  ;;  %v982_v25 = vsel %vm695_vm1, %v974_v41, 0.0 }
 0x205   : >> { %1184 = vperm.xlu2 %2116, %v2562_v21   ;;  %v952_v54 = vpop.permute.xlu2 %951 }
 0x206   : >> { %v976_v12 = vmul.f32 %v952_v54, %v2910_v11  ;;  %v941_v14 = vadd.f32 %v933_v37, %v2877_v16 }
 0x208   : >> { %v2957_v31 = vmul.f32 %v2194_v59, %v941_v14  ;;  %v985_v16 = vsel %vm695_vm1, %v976_v12, 0.0  ;;  %v1155_v59 = vmul.f32 1.442695, %v1147_v45  ;;  %v1149_v12 = vmul.f32 %v2964_v42, %v2439_v2 }
 0x20a   : >> { %2195 = vpow2.f32 %v1155_v59  ;;  %v1151_v59 = vmul.f32 %v2964_v42, %v2449_v4 }
 0x20b   : >> { %1229 = vperm.xlu1 %2115, %v2577_v29   ;;  %v948_v48 = vpop.permute.xlu1 %947 }
 0x20c   : >> { %v975_v44 = vmul.f32 %v948_v48, %v935_v56 }
 0x20d   : >> { %1196 = vperm.xlu2 %2116, %v2568_v24   ;;  %v960_v15 = vpop.permute.xlu2 %959 }
 0x20e   : >> { %v983_v46 = vsel %vm695_vm1, %v975_v44, 0.0  ;;  %v978_v63 = vmul.f32 %v960_v15, %v938_v8 }
 0x20f   : >> { %v984_v11 = vadd.f32 %v983_v46, %v982_v25  ;;  %v2980_v25 = vperm.slane %v2641_v53, 5 }
 0x210   : >> { %v989_v48 = vsel %vm695_vm1, %v978_v63, 0.0 }
 0x211   : >> { %v986_v51 = vadd.f32 %v985_v16, %v984_v11  ;;  %v1159_v11 = vmul.f32 1.442695, %v1149_v12  ;;  %v1292_v45 = vmul.f32 %v2980_v25, %v2439_v2 }
 0x213   : >> { %1241 = vperm.xlu1 %2115, %v2593_v33   ;;  %v956_v56 = vpop.permute.xlu1 %955  ;;  %2197 = vpow2.f32 %v1159_v11  ;;  %v1302_v12 = vmul.f32 1.442695, %v1292_v45 }
 0x214   : >> { %v977_v9 = vmul.f32 %v956_v56, %v937_v58  ;;  %v2977_v58 = vperm.slane %v2682_v38, 3  ;;  %v2196_v56 = vpop.eup %2195 }
 0x215   : >> { %1204 = vperm.xlu2 %2116, %v2573_v27   ;;  %v968_v41 = vpop.permute.xlu2 %967  ;;  %2199 = vpow2.f32 %v1302_v12 }
 0x216   : >> { %v987_v37 = vsel %vm695_vm1, %v977_v9, 0.0  ;;  %v980_v8 = vmul.f32 %v968_v41, %v940_v13  ;;  %v1148_v41 = vmul.f32 %v2964_v42, %v2434_v1 }
 0x217   : >> { %v988_v54 = vadd.f32 %v987_v37, %v986_v51 }
 0x218   : >> { %v993_v9 = vsel %vm695_vm1, %v980_v8, 0.0  ;;  %v1157_v8 = vmul.f32 1.442695, %v1148_v41 }
 0x219   : >> { %v990_v44 = vadd.f32 %v989_v48, %v988_v54  ;;  %v3433_v54 = vmov 5  }
 0x21a   : >> { %2201 = vpow2.f32 %v1157_v8 }
 0x21b   : >> { %1253 = vperm.xlu1 %2115, %v2639_v52   ;;  %v964_v15 = vpop.permute.xlu1 %963 }
 0x21c   : >> { %v979_v46 = vmul.f32 %v964_v15, %v939_v39 }
 0x21d   : >> { %1233 = vperm.xlu2 %2116, %v2581_v30  }
 0x21e   : >> { %v991_v13 = vsel %vm695_vm1, %v979_v46, 0.0  ;;  %v1038_v63 = vpop.permute.xlu2 %1037 }
 0x21f   : >> { %v992_v16 = vadd.f32 %v991_v13, %v990_v44  ;;  %v1069_v51 = vmul.f32 %v2977_v58, %v1038_v63  ;;  %v1163_v13 = vmul.f32 1.442695, %v1151_v59 }
 0x221   : >> { %v994_v37 = vadd.f32 %v993_v9, %v992_v16  ;;  %v2991_v39 = vadd.f32 %v1069_v51, %v2902_v19  ;;  %v2198_v16 = vpop.eup %2197  ;;  %v1150_v51 = vmul.f32 %v2964_v42, %v2444_v3  ;;  %2203 = vpow2.f32 %v1163_v13 }
 0x223   : >> { %2119 = vset.pattern.permute.xlu1 %v3433_v54  ;;  %v972_v48 = vpop.permute.xlu1 %971  ;;  %v2997_v44 = vmul.f32 %v2196_v56, %v2991_v39  ;;  %v1153_v56 = vmul.f32 %v2964_v42, %v2459_v6  ;;  %v1161_v59 = vmul.f32 1.442695, %v1150_v51  ;;  %v1152_v51 = vmul.f32 %v2964_v42, %v2454_v5 }
 0x224   : >> { %v981_v15 = vmul.f32 %v972_v48, %v941_v14  ;;  %1327 = vperm.xlu1 %2119, %v2562_v21   ;;  %v2200_v48 = vpop.eup %2199 }
 0x225   : >> { %1245 = vperm.xlu2 %2116, %v2598_v34   ;;  %v2202_v8 = vpop.eup %2201  ;;  %2205 = vpow2.f32 %v1161_v59 }
 0x226   : >> { %v995_v19 = vsel %vm695_vm1, %v981_v15, 0.0  ;;  %v1046_v46 = vpop.permute.xlu2 %1045 }
 0x227   : >> { %v996_v63 = vadd.f32 %v995_v19, %v994_v37  ;;  %v1071_v11 = vmul.f32 %v2977_v58, %v1046_v46  ;;  %v1167_v46 = vmul.f32 1.442695, %v1153_v56 }
 0x229   : >> { %v997_v45 = vrot.slane %v996_v63, 4  ;;  %v3006_v14 = vadd.f32 %v1071_v11, %v2916_v18  ;;  %2207 = vpow2.f32 %v1167_v46 }
 0x22b   : >> { %v998_v9 = vadd.f32 %v997_v45, %v996_v63  ;;  %v1173_v41 = vmul.f32 %v2198_v16, %v3006_v14  ;;  %v2204_v16 = vpop.eup %2203 }
 0x22c   : >> { %1335 = vperm.xlu1 %2119, %v2566_v23   ;;  %v1042_v37 = vpop.permute.xlu1 %1041 }
 0x22d   : >> { %v999_v12 = vrot.slane %v998_v9, 2  ;;  %v1070_v15 = vmul.f32 %v2977_v58, %v1042_v37  ;;  %1257 = vperm.xlu2 %2116, %v2673_v61   ;;  %v3015_v18 = vadd.f32 %v2785_v57, %v1173_v41 }
 0x22e   : >> { %v1054_v19 = vpop.permute.xlu2 %1053 }
 0x22f   : >> { %v1000_v13 = vadd.f32 %v999_v12, %v998_v9  ;;  %v1073_v63 = vmul.f32 %v2977_v58, %v1054_v19  ;;  %v1078_v11 = vadd.f32 %v1070_v15, %v2925_v36  ;;  %v3022_v45 = vmul.f32 %v2200_v48, %v3015_v18  ;;  %v2206_v48 = vpop.eup %2205 }
 0x230   : >> { %v1165_v12 = vmul.f32 1.442695, %v1152_v51  ;;  %v2208_v46 = vpop.eup %2207 }
 0x231   : >> { %v1001_v37 = vrot.slane %v1000_v13, 1  ;;  %v1081_v57 = vadd.f32 %v1073_v63, %v2928_v60  ;;  %v3025_v41 = vmul.f32 %v2202_v8, %v1078_v11 }
 0x232   : >> { %2209 = vpow2.f32 %v1165_v12 }
 0x233   : >> { %v1002_v56 = vadd.f32 %v1001_v37, %v1000_v13  ;;  %v3027_v9 = vmul.f32 %v2204_v16, %v1081_v57 }
 0x234   : >> { %1347 = vperm.xlu1 %2119, %v2573_v27   ;;  %v1050_v36 = vpop.permute.xlu1 %1049  ;;  %v1154_v27 = vmul.f32 %v2964_v42, %v2464_v7 }
 0x235   : >> { %v3031_v15 = vsel %vm1720_vm3, %v2931_v47, %v1002_v56  ;;  %v1072_v59 = vmul.f32 %v2977_v58, %v1050_v36  ;;  %2120 = vset.pattern.permute.xlu2 %v3433_v54 }
 0x236   : >> { %1331 = vperm.xlu2 %2120, %v2564_v22   ;;  %v1062_v60 = vpop.permute.xlu2 %1061  ;;  %v1169_v16 = vmul.f32 1.442695, %v1154_v27  ;;  %v3062_v27 = vpop.permute.xlu0 %1372 }
 0x237   : >> { %v1075_v8 = vmul.f32 %v2977_v58, %v1062_v60  ;;  %v1080_v19 = vadd.f32 %v1072_v59, %v2940_v62  ;;  %v1297_v62 = vmul.f32 %v2980_v25, %v2464_v7 }
 0x238   : >> { %v2210_v37 = vpop.eup %2209  ;;  %2211 = vpow2.f32 %v1169_v16 }
 0x239   : >> { %v3041_v47 = vadd.f32 %v1075_v8, %v2942_v55  ;;  %v3043_v13 = vmul.f32 %v2206_v48, %v1080_v19  ;;  %v1312_v36 = vmul.f32 1.442695, %v1297_v62 }
 0x23b   : >> { %v3046_v54 = vmul.f32 %v2208_v46, %v3041_v47  ;;  %2213 = vpow2.f32 %v1312_v36 }
 0x23c   : >> { %1376 = vperm.xlu1 %2119, %v2581_v30   ;;  %v1058_v63 = vpop.permute.xlu1 %1057 }
 0x23d   : >> { %v1074_v51 = vmul.f32 %v2977_v58, %v1058_v63 }
 0x23e   : >> { %1339 = vperm.xlu2 %2120, %v2568_v24   ;;  %v1087_v42 = vpop.permute.xlu2 %1086  ;;  %v2212_v60 = vpop.eup %2211 }
 0x23f   : >> { %v1082_v55 = vadd.f32 %v1074_v51, %v2949_v43  ;;  %v1117_v56 = vmul.f32 %v1087_v42, %v2991_v39 }
 0x241   : >> { %v3055_v12 = vmul.f32 %v2210_v37, %v1082_v55  ;;  %v2214_v63 = vpop.eup %2213 }
 0x244   : >> { %1388 = vperm.xlu1 %2119, %v2598_v34   ;;  %v1066_v59 = vpop.permute.xlu1 %1065 }
 0x245   : >> { %v1076_v48 = vmul.f32 %v2977_v58, %v1066_v59 }
 0x246   : >> { %1351 = vperm.xlu2 %2120, %v2575_v28   ;;  %v1095_v8 = vpop.permute.xlu2 %1094 }
 0x247   : >> { %v1119_v46 = vmul.f32 %v1095_v8, %v3006_v14  ;;  %v1084_v43 = vadd.f32 %v1076_v48, %v2957_v31  ;;  %v1125_v14 = vsel %vm695_vm1, %v1117_v56, 0.0 }
 0x249   : >> { %v1178_v39 = vmul.f32 %v2212_v60, %v1084_v43  ;;  %v1128_v59 = vsel %vm695_vm1, %v1119_v46, 0.0  ;;  %v3434_v60 = vmov 6  }
 0x24b   : >> { %v3065_v16 = vadd.f32 %v2796_v50, %v1178_v39  ;;  %v3075_v50 = vpop.permute.xlu0 %1384 }
 0x24c   : >> { %1400 = vperm.xlu1 %2119, %v2673_v61   ;;  %v1091_v62 = vpop.permute.xlu1 %1090 }
 0x24d   : >> { %v1118_v51 = vmul.f32 %v1091_v62, %v1078_v11  ;;  %v3069_v58 = vmul.f32 %v2214_v63, %v3065_v16  ;;  %v1291_v11 = vmul.f32 %v2980_v25, %v2434_v1 }
 0x24e   : >> { %1380 = vperm.xlu2 %2120, %v2587_v32   ;;  %v1103_v37 = vpop.permute.xlu2 %1102 }
 0x24f   : >> { %v1126_v31 = vsel %vm695_vm1, %v1118_v51, 0.0  ;;  %v1121_v42 = vmul.f32 %v1103_v37, %v1081_v57  ;;  %v1122_v57 = vmul.f32 %v2765_v17, %v1082_v55  ;;  %v1300_v62 = vmul.f32 1.442695, %v1291_v11 }
 0x250   : >> { %v1127_v36 = vadd.f32 %v1126_v31, %v1125_v14  ;;  %v1290_v14 = vmul.f32 %v2980_v25, %v2429_v0  ;;  %v3088_v31 = vperm.slane %v2641_v53, 6  ;;  %v1294_v17 = vmul.f32 %v2980_v25, %v2449_v4 }
 0x251   : >> { %v1132_v37 = vsel %vm695_vm1, %v1121_v42, 0.0  ;;  %2215 = vpow2.f32 %v1300_v62  ;;  %v1293_v62 = vmul.f32 %v2980_v25, %v2444_v3 }
 0x252   : >> { %v1129_v48 = vadd.f32 %v1128_v59, %v1127_v36  ;;  %v1298_v42 = vmul.f32 1.442695, %v1290_v14  ;;  %v1296_v14 = vmul.f32 %v2980_v25, %v2459_v6 }
 0x253   : >> { %v3093_v55 = vpop.permute.xlu0 %1396 }
 0x254   : >> { %2123 = vset.pattern.permute.xlu1 %v3434_v60  ;;  %v1099_v8 = vpop.permute.xlu1 %1098  ;;  %2217 = vpow2.f32 %v1298_v42 }
 0x255   : >> { %v1120_v39 = vmul.f32 %v1099_v8, %v1080_v19  ;;  %1474 = vperm.xlu1 %2123, %v2564_v22   ;;  %v1134_v22 = vsel %vm695_vm1, %v1122_v57, 0.0 }
 0x256   : >> { %1392 = vperm.xlu2 %2120, %v2604_v35   ;;  %v1115_v56 = vpop.permute.xlu2 %1114 }
 0x257   : >> { %v1130_v63 = vsel %vm695_vm1, %v1120_v39, 0.0  ;;  %v1124_v46 = vmul.f32 %v1115_v56, %v1084_v43  ;;  %v1306_v39 = vmul.f32 1.442695, %v1294_v17 }
 0x258   : >> { %v1131_v51 = vadd.f32 %v1130_v63, %v1129_v48  ;;  %v1433_v48 = vmul.f32 %v3088_v31, %v2429_v0  ;;  %v2216_v63 = vpop.eup %2215 }
 0x259   : >> { %2219 = vpow2.f32 %v1306_v39 }
 0x25a   : >> { %v1133_v19 = vadd.f32 %v1132_v37, %v1131_v51  ;;  %v1441_v51 = vmul.f32 1.442695, %v1433_v48  ;;  %v2218_v42 = vpop.eup %2217  ;;  %v1310_v48 = vmul.f32 1.442695, %v1296_v14 }
 0x25c   : >> { %v1111_v43 = vpop.permute.xlu1 %1110  ;;  %v1135_v36 = vadd.f32 %v1134_v22, %v1133_v19  ;;  %2221 = vpow2.f32 %v1441_v51 }
 0x25d   : >> { %v1123_v59 = vmul.f32 %v1111_v43, %v3041_v47  ;;  %1482 = vperm.xlu1 %2123, %v2568_v24   ;;  %v1138_v47 = vsel %vm695_vm1, %v1124_v46, 0.0  ;;  %v1304_v43 = vmul.f32 1.442695, %v1293_v62  ;;  %v3112_v46 = vpop.permute.xlu0 %1470 }
 0x25e   : >> { %2121 = vset.pattern.permute.xlu2 %v3434_v60 }
 0x25f   : >> { %v1136_v11 = vsel %vm695_vm1, %v1123_v59, 0.0  ;;  %1466 = vperm.xlu2 %2121, %v2559_v20   ;;  %v1185_v8 = vpop.permute.xlu2 %1184  ;;  %2223 = vpow2.f32 %v1304_v43 }
 0x260   : >> { %v1137_v56 = vadd.f32 %v1136_v11, %v1135_v36  ;;  %v1213_v57 = vmul.f32 %v2776_v49, %v1185_v8  ;;  %2225 = vpow2.f32 %v1310_v48 }
 0x262   : >> { %v1139_v37 = vadd.f32 %v1138_v47, %v1137_v56  ;;  %v1221_v60 = vadd.f32 %v1213_v57, %v3025_v41  ;;  %v2220_v56 = vpop.eup %2219  ;;  %v1295_v57 = vmul.f32 %v2980_v25, %v2454_v5  ;;  %v1438_v25 = vmul.f32 %v3088_v31, %v2454_v5 }
 0x263   : >> { %v2222_v51 = vpop.eup %2221 }
 0x264   : >> { %v1140_v19 = vrot.slane %v1139_v37, 4  ;;  %v3109_v22 = vmul.f32 %v2216_v63, %v1221_v60 }
 0x265   : >> { %1494 = vperm.xlu1 %2123, %v2575_v28   ;;  %v1181_v17 = vpop.permute.xlu1 %1180 }
 0x266   : >> { %v1141_v36 = vadd.f32 %v1140_v19, %v1139_v37  ;;  %v1212_v59 = vmul.f32 %v2776_v49, %v1181_v17  ;;  %v1308_v17 = vmul.f32 1.442695, %v1295_v57 }
 0x267   : >> { %1478 = vperm.xlu2 %2121, %v2566_v23   ;;  %v1197_v41 = vpop.permute.xlu2 %1196 }
 0x268   : >> { %v1142_v11 = vrot.slane %v1141_v36, 2  ;;  %v1216_v8 = vmul.f32 %v2776_v49, %v1197_v41  ;;  %v1220_v39 = vadd.f32 %v1212_v59, %v2997_v44  ;;  %v2224_v59 = vpop.eup %2223  ;;  %2227 = vpow2.f32 %v1308_v17 }
 0x26a   : >> { %v1143_v63 = vadd.f32 %v1142_v11, %v1141_v36  ;;  %v1314_v47 = vmul.f32 %v2218_v42, %v1220_v39  ;;  %v1224_v62 = vadd.f32 %v1216_v8, %v3027_v9  ;;  %v3134_v42 = vpop.permute.xlu0 %1490  ;;  %v2226_v11 = vpop.eup %2225  ;;  %v1451_v8 = vmul.f32 1.442695, %v1438_v25 }
 0x26c   : >> { %v1144_v37 = vrot.slane %v1143_v63, 1  ;;  %v3122_v19 = vadd.f32 %v2847_v40, %v1314_v47  ;;  %v3124_v14 = vmul.f32 %v2220_v56, %v1224_v62  ;;  %2229 = vpow2.f32 %v1451_v8 }
 0x26d   : >> { %1523 = vperm.xlu1 %2123, %v2587_v32   ;;  %v1193_v44 = vpop.permute.xlu1 %1192 }
 0x26e   : >> { %v1145_v43 = vadd.f32 %v1144_v37, %v1143_v63  ;;  %v1215_v36 = vmul.f32 %v2776_v49, %v1193_v44  ;;  %v3131_v9 = vmul.f32 %v2222_v51, %v3122_v19  ;;  %v2228_v51 = vpop.eup %2227 }
 0x26f   : >> { %1486 = vperm.xlu2 %2121, %v2571_v26   ;;  %v1205_v40 = vpop.permute.xlu2 %1204 }
 0x270   : >> { %v3137_v41 = vsel %vm1722_vm4, %v3031_v15, %v1145_v43  ;;  %v1218_v32 = vmul.f32 %v2776_v49, %v1205_v40  ;;  %v1223_v48 = vadd.f32 %v1215_v36, %v3043_v13  ;;  %v3435_v36 = vmov 7  }
 0x272   : >> { %v1226_v56 = vadd.f32 %v1218_v32, %v3046_v54  ;;  %v3142_v57 = vmul.f32 %v2224_v59, %v1223_v48  ;;  %v3150_v17 = vpop.permute.xlu0 %1519  ;;  %v2230_v25 = vpop.eup %2229 }
 0x274   : >> { %v3144_v63 = vmul.f32 %v2226_v11, %v1226_v56 }
 0x275   : >> { %1535 = vperm.xlu1 %2123, %v2604_v35   ;;  %v1201_v47 = vpop.permute.xlu1 %1200 }
 0x276   : >> { %v1217_v15 = vmul.f32 %v2776_v49, %v1201_v47  ;;  %v3436_v49 = vld [vmem:[#allocation3_spill] sm:$0xff] }
 0x277   : >> { %1515 = vperm.xlu2 %2121, %v2577_v29   ;;  %v1234_v37 = vpop.permute.xlu2 %1233  ;;  %v1262_v40 = vmul.f32 %v3436_v49, %v3015_v18 }
 0x278   : >> { %v1225_v13 = vadd.f32 %v1217_v15, %v3055_v12  ;;  %v1261_v44 = vmul.f32 %v1234_v37, %v1221_v60 }
 0x279   : >> { %v1271_v47 = vsel %vm695_vm1, %v1262_v40, 0.0  ;;  %v1434_v40 = vmul.f32 %v3088_v31, %v2434_v1 }
 0x27a   : >> { %v1319_v54 = vmul.f32 %v2228_v51, %v1225_v13  ;;  %v1269_v60 = vsel %vm695_vm1, %v1261_v44, 0.0  ;;  %v3166_v15 = vpop.permute.xlu0 %1531  ;;  %v3437_v44 = vld [vmem:[#allocation4_spill] sm:$0xff] }
 0x27c   : >> { %v3153_v43 = vadd.f32 %v2857_v10, %v1319_v54  ;;  %v1265_v54 = vmul.f32 %v3437_v44, %v1225_v13  ;;  %v1437_v13 = vmul.f32 %v3088_v31, %v2449_v4 }
 0x27d   : >> { %2124 = vset.pattern.permute.xlu1 %v3435_v36  ;;  %v1230_v35 = vpop.permute.xlu1 %1229 }
 0x27e   : >> { %v1260_v59 = vmul.f32 %v1230_v35, %v1220_v39  ;;  %1609 = vperm.xlu1 %2124, %v2559_v20   ;;  %v3160_v32 = vmul.f32 %v2230_v25, %v3153_v43  ;;  %v1435_v20 = vmul.f32 %v3088_v31, %v2439_v2 }
 0x27f   : >> { %1527 = vperm.xlu2 %2121, %v2593_v33   ;;  %v1246_v12 = vpop.permute.xlu2 %1245 }
 0x280   : >> { %v1268_v10 = vsel %vm695_vm1, %v1260_v59, 0.0  ;;  %v1264_v11 = vmul.f32 %v1246_v12, %v1224_v62  ;;  %v1445_v35 = vmul.f32 1.442695, %v1435_v20  ;;  %v1277_v12 = vsel %vm695_vm1, %v1265_v54, 0.0 }
 0x281   : >> { %v1270_v8 = vadd.f32 %v1269_v60, %v1268_v10  ;;  %v1449_v20 = vmul.f32 1.442695, %v1437_v13 }
 0x282   : >> { %v1275_v49 = vsel %vm695_vm1, %v1264_v11, 0.0  ;;  %2231 = vpow2.f32 %v1445_v35  ;;  %v1443_v11 = vmul.f32 1.442695, %v1434_v40 }
 0x283   : >> { %v1272_v39 = vadd.f32 %v1271_v47, %v1270_v8 }
 0x284   : >> { %2233 = vpow2.f32 %v1443_v11 }
 0x285   : >> { %v1242_v18 = vpop.permute.xlu1 %1241  ;;  %2235 = vpow2.f32 %v1449_v20 }
 0x286   : >> { %v1263_v51 = vmul.f32 %v1242_v18, %v1223_v48  ;;  %1621 = vperm.xlu1 %2124, %v2566_v23   ;;  %v3179_v48 = vperm.slane %v2641_v53, 7 }
 0x287   : >> { %1539 = vperm.xlu2 %2121, %v2639_v52   ;;  %v1258_v37 = vpop.permute.xlu2 %1257 }
 0x288   : >> { %v1273_v62 = vsel %vm695_vm1, %v1263_v51, 0.0  ;;  %v1267_v25 = vmul.f32 %v1258_v37, %v3065_v16  ;;  %v3184_v16 = vpop.permute.xlu0 %1543  ;;  %v1577_v47 = vmul.f32 %v3179_v48, %v2434_v1  ;;  %v3438_v51 = vld [vmem:[#allocation5_spill] sm:$0xff]  ;;  %v2232_v44 = vpop.eup %2231 }
 0x289   : >> { %v1274_v59 = vadd.f32 %v1273_v62, %v1272_v39 }
 0x28a   : >> { %v1586_v54 = vmul.f32 1.442695, %v1577_v47  ;;  %v2234_v13 = vpop.eup %2233 }
 0x28b   : >> { %v1276_v23 = vadd.f32 %v1275_v49, %v1274_v59  ;;  %v2236_v47 = vpop.eup %2235 }
 0x28c   : >> { %2237 = vpow2.f32 %v1586_v54 }
 0x28d   : >> { %v1254_v60 = vpop.permute.xlu1 %1253  ;;  %v1278_v10 = vadd.f32 %v1277_v12, %v1276_v23 }
 0x28e   : >> { %v1266_v8 = vmul.f32 %v1254_v60, %v1226_v56  ;;  %1662 = vperm.xlu1 %2124, %v2581_v30   ;;  %v1281_v56 = vsel %vm695_vm1, %v1267_v25, 0.0  ;;  %v1436_v30 = vmul.f32 %v3088_v31, %v2444_v3  ;;  %v3203_v25 = vperm.slane %v2682_v38, 6 }
 0x28f   : >> { %2125 = vset.pattern.permute.xlu2 %v3435_v36 }
 0x290   : >> { %v1279_v53 = vsel %vm695_vm1, %v1266_v8, 0.0  ;;  %1613 = vperm.xlu2 %2125, %v2562_v21   ;;  %v1332_v39 = vpop.permute.xlu2 %1331  ;;  %v1440_v21 = vmul.f32 %v3088_v31, %v2464_v7  ;;  %v1447_v40 = vmul.f32 1.442695, %v1436_v30 }
 0x291   : >> { %v1280_v18 = vadd.f32 %v1279_v53, %v1278_v10  ;;  %v1357_v37 = vmul.f32 %v3438_v51, %v1332_v39  ;;  %v1439_v53 = vmul.f32 %v3088_v31, %v2459_v6  ;;  %v1499_v39 = vmul.f32 %v3203_v25, %v3112_v46 }
 0x292   : >> { %v1455_v10 = vmul.f32 1.442695, %v1440_v21  ;;  %2239 = vpow2.f32 %v1447_v40  ;;  %v1582_v46 = vmul.f32 %v3179_v48, %v2459_v6 }
 0x293   : >> { %v1282_v62 = vadd.f32 %v1281_v56, %v1280_v18  ;;  %v1365_v36 = vadd.f32 %v1357_v37, %v3022_v45  ;;  %v3206_v45 = vpop.permute.xlu0 %1617  ;;  %v1453_v30 = vmul.f32 1.442695, %v1439_v53 }
 0x294   : >> { %2241 = vpow2.f32 %v1455_v10 }
 0x295   : >> { %v1283_v35 = vrot.slane %v1282_v62, 4  ;;  %v3199_v59 = vmul.f32 %v2232_v44, %v1365_v36  ;;  %2243 = vpow2.f32 %v1453_v30 }
 0x296   : >> { %1629 = vperm.xlu1 %2124, %v2571_v26   ;;  %v1328_v49 = vpop.permute.xlu1 %1327 }
 0x297   : >> { %v1284_v23 = vadd.f32 %v1283_v35, %v1282_v62  ;;  %v1356_v12 = vmul.f32 %v3438_v51, %v1328_v49 }
 0x298   : >> { %1658 = vperm.xlu2 %2125, %v2577_v29   ;;  %v1340_v60 = vpop.permute.xlu2 %1339  ;;  %v2238_v29 = vpop.eup %2237 }
 0x299   : >> { %v1285_v8 = vrot.slane %v1284_v23, 2  ;;  %v1359_v11 = vmul.f32 %v3438_v51, %v1340_v60  ;;  %v1364_v26 = vadd.f32 %v1356_v12, %v3109_v22  ;;  %v2240_v21 = vpop.eup %2239 }
 0x29b   : >> { %v1286_v20 = vadd.f32 %v1285_v8, %v1284_v23  ;;  %v1458_v18 = vmul.f32 %v2234_v13, %v1364_v26  ;;  %v3216_v37 = vadd.f32 %v1359_v11, %v3124_v14  ;;  %v2242_v23 = vpop.eup %2241  ;;  %v3236_v12 = vpop.permute.xlu0 %1666  ;;  %v1596_v13 = vmul.f32 1.442695, %v1582_v46 }
 0x29d   : >> { %v1287_v44 = vrot.slane %v1286_v20, 1  ;;  %v3218_v56 = vadd.f32 %v1499_v39, %v1458_v18  ;;  %v3221_v22 = vmul.f32 %v2236_v47, %v3216_v37  ;;  %2245 = vpow2.f32 %v1596_v13 }
 0x29e   : >> { %1674 = vperm.xlu1 %2124, %v2598_v34   ;;  %v1336_v31 = vpop.permute.xlu1 %1335 }
 0x29f   : >> { %v1288_v54 = vadd.f32 %v1287_v44, %v1286_v20  ;;  %v1358_v14 = vmul.f32 %v3438_v51, %v1336_v31  ;;  %v3228_v62 = vmul.f32 %v2238_v29, %v3218_v56  ;;  %v1576_v29 = vmul.f32 %v3179_v48, %v2429_v0 }
 0x2a0   : >> { %1625 = vperm.xlu2 %2125, %v2568_v24   ;;  %v1352_v35 = vpop.permute.xlu2 %1351 }
 0x2a1   : >> { %v3232_v49 = vsel %vm1724_vm5, %v3137_v41, %v1288_v54  ;;  %v1366_v34 = vadd.f32 %v1358_v14, %v3142_v57  ;;  %v1362_v40 = vmul.f32 %v3438_v51, %v1352_v35  ;;  %v2244_v57 = vpop.eup %2243 }
 0x2a3   : >> { %v1370_v60 = vadd.f32 %v1362_v40, %v3069_v58  ;;  %v3239_v10 = vmul.f32 %v2240_v21, %v1366_v34  ;;  %v1504_v58 = vmul.f32 %v3203_v25, %v3134_v42  ;;  %v2246_v20 = vpop.eup %2245  ;;  %v1634_v18 = vpop.permute.xlu0 %1633 }
 0x2a5   : >> { %v3241_v8 = vmul.f32 %v2242_v23, %v1370_v60 }
 0x2a6   : >> { %1682 = vperm.xlu1 %2124, %v2639_v52   ;;  %v1348_v24 = vpop.permute.xlu1 %1347  ;;  %v1403_v52 = vmul.f32 %v3062_v27, %v3122_v19  ;;  %v1584_v27 = vmul.f32 1.442695, %v1576_v29  ;;  %v1406_v19 = vmul.f32 %v3075_v50, %v1366_v34 }
 0x2a7   : >> { %v1361_v41 = vmul.f32 %v3438_v51, %v1348_v24  ;;  %v3254_v51 = vperm.slane %v2682_v38, 7 }
 0x2a8   : >> { %1670 = vperm.xlu2 %2125, %v2593_v33   ;;  %v1381_v11 = vpop.permute.xlu2 %1380  ;;  %v1411_v31 = vsel %vm695_vm1, %v1403_v52, 0.0  ;;  %v1416_v35 = vsel %vm695_vm1, %v1406_v19, 0.0  ;;  %2247 = vpow2.f32 %v1584_v27 }
 0x2a9   : >> { %v1369_v47 = vadd.f32 %v1361_v41, %v3144_v63  ;;  %v1405_v53 = vmul.f32 %v1381_v11, %v1365_v36  ;;  %v1647_v63 = vmul.f32 %v3254_v51, %v1634_v18 }
 0x2ab   : >> { %v1463_v39 = vmul.f32 %v2244_v57, %v1369_v47  ;;  %v1414_v21 = vsel %vm695_vm1, %v1405_v53, 0.0 }
 0x2ad   : >> { %v3256_v33 = vadd.f32 %v1504_v58, %v1463_v39  ;;  %v1578_v58 = vmul.f32 %v3179_v48, %v2439_v2 }
 0x2ae   : >> { %v1377_v44 = vpop.permute.xlu1 %1376  ;;  %v2248_v11 = vpop.eup %2247 }
 0x2af   : >> { %v1404_v36 = vmul.f32 %v1377_v44, %v1364_v26  ;;  %v1606_v42 = vmul.f32 %v2246_v20, %v3256_v33  ;;  %v1588_v29 = vmul.f32 1.442695, %v1578_v58 }
 0x2b0   : >> { %1637 = vperm.xlu2 %2125, %v2575_v28   ;;  %v1393_v30 = vpop.permute.xlu2 %1392  ;;  %v1579_v28 = vmul.f32 %v3179_v48, %v2444_v3 }
 0x2b1   : >> { %v1412_v46 = vsel %vm695_vm1, %v1404_v36, 0.0  ;;  %v1408_v38 = vmul.f32 %v1393_v30, %v3153_v43  ;;  %v3265_v54 = vadd.f32 %v1647_v63, %v1606_v42   ;;  %v1409_v43 = vmul.f32 %v3093_v55, %v1369_v47 }
 0x2b2   : >> { %v1413_v14 = vadd.f32 %v1412_v46, %v1411_v31  ;;  %v1590_v24 = vmul.f32 1.442695, %v1579_v28  ;;  %v1581_v55 = vmul.f32 %v3179_v48, %v2454_v5  ;;  %v1580_v30 = vmul.f32 %v3179_v48, %v2449_v4 }
 0x2b3   : >> { %v1420_v53 = vsel %vm695_vm1, %v1408_v38, 0.0 }
 0x2b4   : >> { %v1415_v26 = vadd.f32 %v1414_v21, %v1413_v14  ;;  %2249 = vpow2.f32 %v1590_v24  ;;  %v1594_v36 = vmul.f32 1.442695, %v1581_v55  ;;  %v1592_v14 = vmul.f32 1.442695, %v1580_v30 }
 0x2b5   : >> { %2251 = vpow2.f32 %v1588_v29 }
 0x2b6   : >> { %v1389_v40 = vpop.permute.xlu1 %1388  ;;  %v1417_v23 = vadd.f32 %v1416_v35, %v1415_v26  ;;  %2253 = vpow2.f32 %v1594_v36 }
 0x2b7   : >> { %v1407_v50 = vmul.f32 %v1389_v40, %v3216_v37  ;;  %2255 = vpow2.f32 %v1592_v14 }
 0x2b8   : >> { %1686 = vperm.xlu2 %2125, %v2673_v61   ;;  %v1422_v61 = vsel %vm695_vm1, %v1409_v43, 0.0 }
 0x2b9   : >> { %v1418_v34 = vsel %vm695_vm1, %v1407_v50, 0.0  ;;  %v1467_v13 = vpop.permute.xlu2 %1466 }
 0x2ba   : >> { %v1419_v41 = vadd.f32 %v1418_v34, %v1417_v23  ;;  %v1498_v57 = vmul.f32 %v3203_v25, %v1467_v13  ;;  %v1643_v34 = vmul.f32 %v3254_v51, %v3206_v45 }
 0x2bc   : >> { %v1421_v39 = vadd.f32 %v1420_v53, %v1419_v41  ;;  %v1506_v37 = vadd.f32 %v1498_v57, %v3131_v9  ;;  %v2250_v9 = vpop.eup %2249 }
 0x2bd   : >> { %v2252_v35 = vpop.eup %2251 }
 0x2be   : >> { %v1401_v47 = vpop.permute.xlu1 %1400  ;;  %v1423_v20 = vadd.f32 %v1422_v61, %v1421_v39  ;;  %v3283_v18 = vmul.f32 %v2248_v11, %v1506_v37  ;;  %v2254_v43 = vpop.eup %2253 }
 0x2bf   : >> { %v1410_v52 = vmul.f32 %v1401_v47, %v1370_v60  ;;  %v2256_v45 = vpop.eup %2255 }
 0x2c1   : >> { %v1424_v44 = vsel %vm695_vm1, %v1410_v52, 0.0  ;;  %v1479_v63 = vpop.permute.xlu2 %1478 }
 0x2c2   : >> { %v1425_v42 = vadd.f32 %v1424_v44, %v1423_v20  ;;  %v1501_v31 = vmul.f32 %v3203_v25, %v1479_v63 }
 0x2c4   : >> { %v1426_v27 = vrot.slane %v1425_v42, 4  ;;  %v1509_v19 = vadd.f32 %v1501_v31, %v3239_v10  ;;  %v1583_v10 = vmul.f32 %v3179_v48, %v2464_v7  ;;  %v1547_v48 = vmul.f32 %v3150_v17, %v3218_v56 }
 0x2c6   : >> { %v1427_v46 = vadd.f32 %v1426_v27, %v1425_v42  ;;  %v3290_v38 = vmul.f32 %v2250_v9, %v1509_v19  ;;  %v1555_v20 = vsel %vm695_vm1, %v1547_v48, 0.0 }
 0x2c7   : >> { %v1475_v60 = vpop.permute.xlu1 %1474 }
 0x2c8   : >> { %v1428_v21 = vrot.slane %v1427_v46, 2  ;;  %v1500_v26 = vmul.f32 %v3203_v25, %v1475_v60 }
 0x2c9   : >> { %v1487_v28 = vpop.permute.xlu2 %1486 }
 0x2ca   : >> { %v1429_v40 = vadd.f32 %v1428_v21, %v1427_v46  ;;  %v1503_v23 = vmul.f32 %v3203_v25, %v1487_v28  ;;  %v1508_v50 = vadd.f32 %v1500_v26, %v3199_v59  ;;  %v1598_v59 = vmul.f32 1.442695, %v1583_v10 }
 0x2cc   : >> { %v1430_v13 = vrot.slane %v1429_v40, 1  ;;  %v1602_v24 = vmul.f32 %v2252_v35, %v1508_v50  ;;  %v1511_v41 = vadd.f32 %v1503_v23, %v3160_v32  ;;  %2257 = vpow2.f32 %v1598_v59 }
 0x2ce   : >> { %v1431_v57 = vadd.f32 %v1430_v13, %v1429_v40  ;;  %v3300_v14 = vadd.f32 %v1643_v34, %v1602_v24   ;;  %v3302_v11 = vmul.f32 %v2254_v43, %v1511_v41 }
 0x2cf   : >> { %v1483_v53 = vpop.permute.xlu1 %1482 }
 0x2d0   : >> { %v1727_v58 = vsel %vm1726_vm6, %v3232_v49, %v1431_v57  ;;  %v1502_v39 = vmul.f32 %v3203_v25, %v1483_v53 }
 0x2d1   : >> { %v1516_v61 = vpop.permute.xlu2 %1515 }
 0x2d2   : >> { %v1510_v55 = vadd.f32 %v1502_v39, %v3221_v22  ;;  %v1546_v32 = vmul.f32 %v1516_v61, %v1506_v37  ;;  %v2258_v63 = vpop.eup %2257 }
 0x2d4   : >> { %v1554_v47 = vsel %vm695_vm1, %v1546_v32, 0.0  ;;  %v1604_v52 = vmul.f32 %v2256_v45, %v1510_v55  ;;  %v1550_v9 = vmul.f32 %v3166_v15, %v1510_v55 }
 0x2d5   : >> { %v1556_v29 = vadd.f32 %v1555_v20, %v1554_v47 }
 0x2d7   : >> { %v1495_v44 = vpop.permute.xlu1 %1494 }
 0x2d8   : >> { %v1505_v49 = vmul.f32 %v3203_v25, %v1495_v44  ;;  %v1561_v25 = vsel %vm695_vm1, %v1550_v9, 0.0  ;;  %v1691_v44 = vmul.f32 %v3236_v12, %v3300_v14 }
 0x2d9   : >> { %v1528_v36 = vpop.permute.xlu2 %1527 }
 0x2da   : >> { %v1513_v42 = vadd.f32 %v1505_v49, %v3241_v8  ;;  %v1549_v31 = vmul.f32 %v1528_v36, %v1509_v19 }
 0x2dc   : >> { %v3313_v17 = vmul.f32 %v2258_v63, %v1513_v42  ;;  %v1559_v46 = vsel %vm695_vm1, %v1549_v31, 0.0  ;;  %v1553_v28 = vmul.f32 %v3184_v16, %v1513_v42 }
 0x2de   : >> { %v1567_v10 = vsel %vm695_vm1, %v1553_v28, 0.0 }
 0x2df   : >> { %v1524_v56 = vpop.permute.xlu1 %1523 }
 0x2e0   : >> { %v1548_v22 = vmul.f32 %v1524_v56, %v1508_v50 }
 0x2e1   : >> { %v1540_v37 = vpop.permute.xlu2 %1539 }
 0x2e2   : >> { %v1557_v30 = vsel %vm695_vm1, %v1548_v22, 0.0  ;;  %v1552_v8 = vmul.f32 %v1540_v37, %v3256_v33  ;;  %v488_v37 = vld [vmem:[%s487_s11] sm:$0xff] }
 0x2e3   : >> { %v1558_v27 = vadd.f32 %v1557_v30, %v1556_v29 }
 0x2e4   : >> { %v1565_v50 = vsel %vm695_vm1, %v1552_v8, 0.0 }
 0x2e5   : >> { %v1560_v60 = vadd.f32 %v1559_v46, %v1558_v27  ;;  %v1732_v27 = vsub.f32 0.0, %v488_v37  ;;  %v1679_v46 = vpop.permute.xlu0 %1678 }
 0x2e7   : >> { %v1536_v21 = vpop.permute.xlu1 %1535  ;;  %v1562_v26 = vadd.f32 %v1561_v25, %v1560_v60  ;;  %v1733_v25 = vmul.f32 1.442695, %v1732_v27 }
 0x2e8   : >> { %v1551_v35 = vmul.f32 %v1536_v21, %v1511_v41 }
 0x2e9   : >> { %2259 = vpow2.f32 %v1733_v25 }
 0x2ea   : >> { %v1563_v19 = vsel %vm695_vm1, %v1551_v35, 0.0  ;;  %v1614_v40 = vpop.permute.xlu2 %1613 }
 0x2eb   : >> { %v1564_v23 = vadd.f32 %v1563_v19, %v1562_v26  ;;  %v1642_v15 = vmul.f32 %v3254_v51, %v1614_v40 }
 0x2ed   : >> { %v1566_v43 = vadd.f32 %v1565_v50, %v1564_v23  ;;  %v3325_v15 = vadd.f32 %v1642_v15, %v3228_v62  }
 0x2ef   : >> { %v1568_v34 = vadd.f32 %v1567_v10, %v1566_v43 }
 0x2f0   : >> { %v1610_v13 = vpop.permute.xlu1 %1609 }
 0x2f1   : >> { %v1569_v33 = vrot.slane %v1568_v34, 4  ;;  %v1641_v24 = vmul.f32 %v3254_v51, %v1610_v13 }
 0x2f2   : >> { %v1659_v16 = vpop.permute.xlu2 %1658 }
 0x2f3   : >> { %v1570_v41 = vadd.f32 %v1569_v33, %v1568_v34  ;;  %v3330_v57 = vadd.f32 %v1641_v24, %v3283_v18  }
 0x2f5   : >> { %v1571_v53 = vrot.slane %v1570_v41, 2  ;;  %v1689_v18 = vmul.f32 %v1659_v16, %v3330_v57 }
 0x2f7   : >> { %v1572_v59 = vadd.f32 %v1571_v53, %v1570_v41  ;;  %v1697_v63 = vsel %vm695_vm1, %v1689_v18, 0.0 }
 0x2f8   : >> { %v1622_v39 = vpop.permute.xlu1 %1621 }
 0x2f9   : >> { %v1573_v48 = vrot.slane %v1572_v59, 1  ;;  %v1644_v45 = vmul.f32 %v3254_v51, %v1622_v39 }
 0x2fa   : >> { %v1626_v62 = vpop.permute.xlu2 %1625 }
 0x2fb   : >> { %v1574_v61 = vadd.f32 %v1573_v48, %v1572_v59  ;;  %v1645_v55 = vmul.f32 %v3254_v51, %v1626_v62  ;;  %v3335_v13 = vadd.f32 %v1644_v45, %v3290_v38   ;;  %v3439_v59 = vld [vmem:[#allocation2_spill] sm:$0xff] }
 0x2fc   : >> { %v1739_v39 = vperm.slane %v3439_v59, 0 }
 0x2fd   : >> { %v1729_v32 = vsel %vm1728_vm7, %v1727_v58, %v1574_v61  ;;  %v3337_v47 = vadd.f32 %v1645_v55, %v1604_v52   ;;  %v1700_v58 = vsel %vm695_vm1, %v1691_v44, 0.0  ;;  %v2263_v61 = vld [vmem:[%s2671_s29] sm:$0xff] }
 0x2fe   : >> { %v1741_v55 = vmul.f32 %v2263_v61, %v1739_v39 }
 0x300   : >> { %v1663_v20 = vpop.permute.xlu1 %1662 }
 0x301   : >> { %v1690_v29 = vmul.f32 %v1663_v20, %v3325_v15 }
 0x302   : >> { %v1671_v49 = vpop.permute.xlu2 %1670 }
 0x303   : >> { %v1698_v36 = vsel %vm695_vm1, %v1690_v29, 0.0  ;;  %v1692_v42 = vmul.f32 %v1671_v49, %v3335_v13 }
 0x304   : >> { %v1699_v38 = vadd.f32 %v1698_v36, %v1697_v63 }
 0x305   : >> { %v1702_v56 = vsel %vm695_vm1, %v1692_v42, 0.0 }
 0x306   : >> { %v1701_v52 = vadd.f32 %v1700_v58, %v1699_v38 }
 0x308   : >> { %v1703_v31 = vadd.f32 %v1702_v56, %v1701_v52  ;;  %v1630_v12 = vpop.permute.xlu1 %1629 }
 0x309   : >> { %v1646_v22 = vmul.f32 %v3254_v51, %v1630_v12  ;;  %v3441_v12 = vmov %v3337_v47 }
 0x30a   : >> { %v1638_v9 = vpop.permute.xlu2 %1637 }
 0x30b   : >> { %v1654_v11 = vadd.f32 %v1646_v22, %v3302_v11   ;;  %v1648_v30 = vmul.f32 %v3254_v51, %v1638_v9 }
 0x30d   : >> { %v1656_v9 = vadd.f32 %v1648_v30, %v3313_v17   ;;  %v1694_v21 = vmul.f32 %v1679_v46, %v1654_v11  ;;  %v2260_v17 = vpop.eup %2259 }
 0x30e   : >> { %v1735_v33 = vadd.f32 1.0, %v2260_v17 }
 0x30f   : >> { %v1706_v28 = vsel %vm695_vm1, %v1694_v21, 0.0 }
 0x310   : >> { %v1675_v60 = vpop.permute.xlu1 %1674  ;;  %2261 = vrcp.f32 %v1735_v33 }
 0x311   : >> { %v1693_v26 = vmul.f32 %v1675_v60, %v3337_v47 }
 0x312   : >> { %v1687_v19 = vpop.permute.xlu2 %1686 }
 0x313   : >> { %v1704_v8 = vsel %vm695_vm1, %v1693_v26, 0.0  ;;  %v1696_v50 = vmul.f32 %v1687_v19, %v1656_v9 }
 0x314   : >> { %v1705_v35 = vadd.f32 %v1704_v8, %v1703_v31 }
 0x315   : >> { %v1710_v34 = vsel %vm695_vm1, %v1696_v50, 0.0 }
 0x316   : >> { %v1707_v40 = vadd.f32 %v1706_v28, %v1705_v35  ;;  %v2262_v45 = vpop.eup %2261 }
 0x317   : >> { %v1737_v20 = vmul.f32 %v2262_v45, %v488_v37 }
 0x318   : >> { %v1683_v23 = vpop.permute.xlu1 %1682 }
 0x319   : >> { %v1695_v51 = vmul.f32 %v1683_v23, %v3265_v54 }
 0x31b   : >> { %v1708_v43 = vsel %vm695_vm1, %v1695_v51, 0.0 }
 0x31c   : >> { %v1709_v10 = vadd.f32 %v1708_v43, %v1707_v40 }
 0x31e   : >> { %v1711_v24 = vadd.f32 %v1710_v34, %v1709_v10  ;;  %v3440_v10 = vmov %v3265_v54 }
 0x320   : >> { %v1712_v16 = vrot.slane %v1711_v24, 4 }
 0x322   : >> { %v1713_v41 = vadd.f32 %v1712_v16, %v1711_v24  ;;  %v3442_v16 = vmov %v3330_v57 }
 0x324   : >> { %v1714_v53 = vrot.slane %v1713_v41, 2 }
 0x326   : >> { %v1715_v48 = vadd.f32 %v1714_v53, %v1713_v41 }
 0x328   : >> { %v1716_v62 = vrot.slane %v1715_v48, 1 }
 0x32a   : >> { %v1717_v18 = vadd.f32 %v1716_v62, %v1715_v48 }
 0x32c   : >> { %v1731_v29 = vsel %vm1730_vm8, %v1729_v32, %v1717_v18 }
 0x32d   : >> { %v1742_v44 = vadd.f32 %v1741_v55, %v1731_v29  ;;  %456 = sbr.rel (!%p454_p5) target bundleno = 17 (0x11), region = 109 }
 0x32f   : >> { %v1743_v49 = vmul.f32 %v1742_v44, %v1737_v20 }
 0x331   : >> { %1745 = vst.msk [vmem:[%s1744_s14] sm:$0xff] %vm695_vm1, %v1743_v49 }
 0x332 PF: > { %s17_s26 = sadd.s32 1, %s2322_s26   ;;  %s3443_s24 = smov %s2318_s25 }
 0x333   : > { %p14_p6 = scmp.ge.s32.totalorder %s17_s26, 4   ;;  %s3444_s25 = smov %s3446_s27 }
 0x335   :  { %16 = sbr.rel (!%p14_p6) target bundleno = 2 (0x2), region = 120 }

</bundles_post_ra>
